<compile_context>
chip_gen: v7x
topology: tpu7x:2x2x1
jax: 0.10.0
libtpu: 0.0.40
codegen_flags: <defaults>
</compile_context>

<pallas_src>
import functools

import jax
import jax.numpy as jnp
import numpy as np
from jax import lax
from jax.experimental import pallas as pl
from jax.experimental.pallas import tpu as pltpu


# ----------------------------------------------------------------------------
# Fused Pallas kernel: wavefronted 2-layer LSTM + FC head, single invocation.
# ----------------------------------------------------------------------------
def _make_char_rnn_kernel(T, B, Bp, H):
    """Builds the fused kernel for fixed static (T, B, Bp, H); 2 LSTM layers."""
    H2, H4, H6, H8 = 2 * H, 4 * H, 6 * H, 8 * H
    bf16 = jnp.bfloat16
    f32 = jnp.float32

    def kernel(x_ref, w_big_ref, w_x_ref, b_big_ref, fc_w_ref, fc_b_ref,
               h0_ref, c0_ref,
               logits_ref, hn_ref, cn_ref,
               gin_sc, y1_sc, st_sc):
        # ---------------- one-time prologue (off the serial recurrence) ------
        # (a) Pack the caller's (L, B, H) initial state into the fused (Bp, 2H)
        #     layout [h_l0 | h_l1]; pad rows are zeroed (row-independent,
        #     never read back into real outputs).
        st_sc[...] = jnp.zeros_like(st_sc)
        st_sc[0, 0:B, 0:H] = h0_ref[0]
        st_sc[0, 0:B, H:H2] = h0_ref[1]
        st_sc[1, 0:B, 0:H] = c0_ref[0]
        st_sc[1, 0:B, H:H2] = c0_ref[1]
        h_cat = st_sc[0]                           # (Bp, 2H) f32
        c_cat = st_sc[1]                           # (Bp, 2H) f32

        # (b) Hoisted, time-parallel layer-0 input projection (+ both biases),
        #     stored time-major so the loop does aligned gin_sc[t] loads.
        #     Layer-1 gate columns of w_x are zero, so gin_sc[t, :, 4H:8H] == b1.
        gin_sc[...] = jnp.zeros_like(gin_sc)
        w_x = w_x_ref[...]                         # (V, 8H) bf16
        b_big = b_big_ref[...]                     # (1, 8H) f32
        for b in range(B):                         # static, tiny
            gx = jnp.dot(x_ref[b].astype(bf16), w_x,
                         preferred_element_type=f32) + b_big        # (T, 8H)
            for t in range(T):                     # static in-kernel relayout
                gin_sc[t, b:b + 1, :] = gx[t:t + 1, :]

        # Loop-invariant values (hoisted; not rebuilt per iteration).
        w_big = w_big_ref[...]                     # (2H, 8H) bf16, resident
        col8 = lax.broadcasted_iota(jnp.int32, (Bp, H8), 1)
        g_lanes = (col8 >= H4) & (col8 < H6)       # tanh (g-gate) lanes
        col2 = lax.broadcasted_iota(jnp.int32, (Bp, H2), 1)
        l0_half = col2 < H                         # layer-0 state lanes

        def fused_cell(h_c, c_c, gin_t):
            # One MXU push computes both layers' gate pre-activations:
            # columns are [i0,i1,f0,f1,g0,g1,o0,o1], each H wide.
            g = jnp.dot(h_c.astype(bf16), w_big,
                        preferred_element_type=f32) + gin_t          # (Bp, 8H) f32
            # 2 full-width EUP passes + one lane-iota select, f32 throughout.
            act = jnp.where(g_lanes, jnp.tanh(g), jax.nn.sigmoid(g))
            i_c = act[:, 0:H2]
            f_c = act[:, H2:H4]
            g_c = act[:, H4:H6]
            o_c = act[:, H6:H8]
            c_new = f_c * c_c + i_c * g_c
            h_new = o_c * jnp.tanh(c_new)
            return h_new, c_new

        # ---- wavefront step s = 0: layer-0 time 0 only -----------------------
        h_new, c_new = fused_cell(h_cat, c_cat, gin_sc[0])
        h_cat = jnp.where(l0_half, h_new, h_cat)   # commit layer-0 half only
        c_cat = jnp.where(l0_half, c_new, c_cat)

        # ---- steady state s = 1..T-1: layer-0 time s + layer-1 time s-1 ------
        def step(s, carry):
            h_c, c_c = carry
            h_n, c_n = fused_cell(h_c, c_c, gin_sc[s])
            y1_sc[s - 1] = h_n[:, H:H2]            # aligned (Bp, H) store
            return h_n, c_n

        h_cat, c_cat = lax.fori_loop(1, T, step, (h_cat, c_cat), unroll=True)

        # ---- wavefront step s = T: layer-1 time T-1 only ----------------------
        # gin_sc[T-1]'s layer-1 columns hold b1 (time-independent); the layer-0
        # columns of this step are discarded.
        h_new, c_new = fused_cell(h_cat, c_cat, gin_sc[T - 1])
        h_cat = jnp.where(l0_half, h_cat, h_new)   # commit layer-1 half only
        c_cat = jnp.where(l0_half, c_cat, c_new)
        y1_sc[T - 1] = h_new[:, H:H2]

        # ---- final hidden/cell state, written exactly once --------------------
        hn_ref[0] = h_cat[0:B, 0:H]
        hn_ref[1] = h_cat[0:B, H:H2]
        cn_ref[0] = c_cat[0:B, 0:H]
        cn_ref[1] = c_cat[0:B, H:H2]

        # ---- fused FC head; logits written batch-first (row = b*T + t) -------
        fc_w = fc_w_ref[...]                       # (H, V) bf16
        fc_b = fc_b_ref[...]                       # (1, V) f32
        y_all = y1_sc[...]                         # (T, Bp, H)
        for b in range(B):                         # static, tiny
            yb = y_all[:, b, :]                    # (T, H)
            logits_ref[b * T:(b + 1) * T, :] = (
                jnp.dot(yb.astype(bf16), fc_w, preferred_element_type=f32)
                + fc_b).astype(logits_ref.dtype)

    return kernel


def _interleave_gate_blocks(a0, a1, H):
    """[i|f|g|o] column blocks of two layers -> [i0,i1,f0,f1,g0,g1,o0,o1]."""
    blocks = []
    for g in range(4):
        blocks.append(a0[:, g * H:(g + 1) * H])
        blocks.append(a1[:, g * H:(g + 1) * H])
    return jnp.concatenate(blocks, axis=-1)


# ----------------------------------------------------------------------------
# Model wrapper
# ----------------------------------------------------------------------------
class CharRNNPallas:
    """JAX/Pallas port of CharRNN (forward pass, eval-mode). num_layers == 2."""

    def __init__(self, tokens, hidden_size=32, num_layers=2, drop_prob=0.1, key=None):
        assert num_layers == 2, "fused wavefront kernel is specialized for 2 layers"
        self.vocab_size = len(tokens)
        self.hidden_size = hidden_size
        self.num_layers = num_layers
        self.drop_prob = drop_prob
        self.chars = tokens

        key = jax.random.PRNGKey(0) if key is None else key
        k_lstm = 1.0 / np.sqrt(hidden_size)
        k_fc = 1.0 / np.sqrt(hidden_size)
        params = {}
        for layer in range(num_layers):
            in_size = self.vocab_size if layer == 0 else hidden_size
            key, k1, k2, k3 = jax.random.split(key, 4)
            # Stored pre-transposed: (in, 4H) / (H, 4H), PyTorch gate order [i|f|g|o].
            # NOTE: combined bias ~ U(-2k, 2k) is an init-only difference from
            # PyTorch's b_ih + b_hh (triangular); not a runtime-semantics issue.
            params[f"w_ih_{layer}"] = jax.random.uniform(
                k1, (in_size, 4 * hidden_size), jnp.float32, -k_lstm, k_lstm)
            params[f"w_hh_{layer}"] = jax.random.uniform(
                k2, (hidden_size, 4 * hidden_size), jnp.float32, -k_lstm, k_lstm)
            params[f"b_{layer}"] = jax.random.uniform(
                k3, (1, 4 * hidden_size), jnp.float32, -2 * k_lstm, 2 * k_lstm)
        key, k1, k2 = jax.random.split(key, 3)
        params["fc_w"] = jax.random.uniform(
            k1, (hidden_size, self.vocab_size), jnp.float32, -k_fc, k_fc)
        params["fc_b"] = jax.random.uniform(
            k2, (1, self.vocab_size), jnp.float32, -k_fc, k_fc)
        self.params = params

        # --- one-time fused / bf16 parameter layout for the kernel -----------
        H = hidden_size
        zeros_h = jnp.zeros((H, 4 * H), jnp.float32)
        zeros_v = jnp.zeros((self.vocab_size, 4 * H), jnp.float32)
        w_big = jnp.concatenate([
            _interleave_gate_blocks(params["w_hh_0"], params["w_ih_1"], H),  # rows 0:H
            _interleave_gate_blocks(zeros_h, params["w_hh_1"], H),           # rows H:2H
        ], axis=0)                                                           # (2H, 8H)
        w_x = _interleave_gate_blocks(params["w_ih_0"], zeros_v, H)          # (V, 8H)
        b_big = _interleave_gate_blocks(params["b_0"], params["b_1"], H)     # (1, 8H)
        self.kp = {
            "w_big": w_big.astype(jnp.bfloat16),
            "w_x": w_x.astype(jnp.bfloat16),
            "b_big": b_big,                                   # f32
            "fc_w": params["fc_w"].astype(jnp.bfloat16),
            "fc_b": params["fc_b"],                           # f32
        }

    def init_hidden(self, batch_size):
        z = jnp.zeros((self.num_layers, batch_size, self.hidden_size), jnp.float32)
        return (z, z)

    @functools.partial(jax.jit, static_argnums=0)
    def forward(self, x, hidden):
        """x: (B, T, V); hidden: tuple of (L, B, H). Returns ((B*T, V), hidden)."""
        h_in, c_in = hidden
        B, T, V = x.shape
        H = self.hidden_size
        L = self.num_layers
        Bp = max(8, ((B + 7) // 8) * 8)      # batch rows padded to 8-sublane tiles

        kernel = _make_char_rnn_kernel(T, B, Bp, H)
        logits, h_n, c_n = pl.pallas_call(
            kernel,
            out_shape=(
                jax.ShapeDtypeStruct((B * T, V), jnp.float32),   # logits, batch-first
                jax.ShapeDtypeStruct((L, B, H), jnp.float32),    # h_N
                jax.ShapeDtypeStruct((L, B, H), jnp.float32),    # c_N
            ),
            scratch_shapes=[
                pltpu.VMEM((T, Bp, 8 * H), jnp.float32),   # hoisted x-proj + biases
                pltpu.VMEM((T, Bp, H), jnp.float32),       # layer-1 outputs for FC
                pltpu.VMEM((2, Bp, 2 * H), jnp.float32),   # packed initial {h, c}
            ],
        )(x, self.kp["w_big"], self.kp["w_x"], self.kp["b_big"],
          self.kp["fc_w"], self.kp["fc_b"], h_in, c_in)
        return logits, (h_n, c_n)


# ----------------------------------------------------------------------------
# Pure-JAX reference mirroring the kernel's numerics (bf16 dot operands,
# f32 accumulation + f32 gate math) for the correctness check.
# ----------------------------------------------------------------------------
def forward_ref(model, x, hidden):
    bf = jnp.bfloat16
    p = model.params
    h_in, c_in = hidden
    B, T, V = x.shape
    H = model.hidden_size

    layer_in = jnp.transpose(x, (1, 0, 2))          # (T, B, in)
    h_out, c_out = [], []
    for layer in range(model.num_layers):
        w_ih = p[f"w_ih_{layer}"].astype(bf)
        w_hh = p[f"w_hh_{layer}"].astype(bf)
        bias = p[f"b_{layer}"]

        def step(carry, x_t):
            h, c = carry
            gates = (jnp.dot(x_t.astype(bf), w_ih, preferred_element_type=jnp.float32)
                     + jnp.dot(h.astype(bf), w_hh, preferred_element_type=jnp.float32)
                     + bias)
            i, f, g, o = jnp.split(gates, 4, axis=-1)
            i, f, o = jax.nn.sigmoid(i), jax.nn.sigmoid(f), jax.nn.sigmoid(o)
            g = jnp.tanh(g)
            c = f * c + i * g
            h = o * jnp.tanh(c)
            return (h, c), h

        (hN, cN), ys = lax.scan(step, (h_in[layer], c_in[layer]), layer_in)
        layer_in = ys
        h_out.append(hN)
        c_out.append(cN)

    flat = jnp.transpose(layer_in, (1, 0, 2)).reshape(B * T, H)
    logits = (jnp.dot(flat.astype(bf), p["fc_w"].astype(bf),
                      preferred_element_type=jnp.float32) + p["fc_b"])
    return logits, jnp.stack(h_out), jnp.stack(c_out)


# ----------------------------------------------------------------------------
if __name__ == "__main__":
    tokens = list("abcdefghijklmnop")   # vocab_size = 16
    B, T, H, L = 2, 8, 32, 2

    model = CharRNNPallas(tokens, hidden_size=H, num_layers=L,
                          key=jax.random.PRNGKey(0))

    key = jax.random.PRNGKey(0)
    k_idx, k_h, k_c = jax.random.split(key, 3)
    idx = jax.random.randint(k_idx, (B, T), 0, model.vocab_size)
    x = jax.nn.one_hot(idx, model.vocab_size, dtype=jnp.float32)   # (B, T, V)
    # Non-zero initial state exercises the h0/c0 packing and the wavefront
    # boundary handling; model.init_hidden(B) (zeros) also works.
    hidden = (0.1 * jax.random.normal(k_h, (L, B, H), jnp.float32),
              0.1 * jax.random.normal(k_c, (L, B, H), jnp.float32))

    logits, (h_n, c_n) = model.forward(x, hidden)
    logits = jax.block_until_ready(logits)
    jax.block_until_ready(h_n)
    jax.block_until_ready(c_n)

    assert logits.shape == (B * T, model.vocab_size)
    assert h_n.shape == (L, B, H) and c_n.shape == (L, B, H)

    ref_logits, ref_h, ref_c = forward_ref(model, x, hidden)
    # bf16 MXU operands (kernel) vs XLA reference with the same bf16 casts:
    # tolerances account for transcendental-impl & rounding-order differences.
    np.testing.assert_allclose(np.asarray(logits), np.asarray(ref_logits),
                               rtol=5e-3, atol=5e-3)
    np.testing.assert_allclose(np.asarray(h_n), np.asarray(ref_h),
                               rtol=5e-3, atol=5e-3)
    np.testing.assert_allclose(np.asarray(c_n), np.asarray(ref_c),
                               rtol=5e-3, atol=5e-3)

    print("KERNEL_OK")
</pallas_src>

<mosaic_0001>
module attributes {stable_mosaic.version = 11 : i64} {
  func.func @kernel(%arg0: memref<2x8x16xf32, #tpu.memory_space<vmem>>, %arg1: memref<64x256xbf16, #tpu.memory_space<vmem>>, %arg2: memref<16x256xbf16, #tpu.memory_space<vmem>>, %arg3: memref<1x256xf32, #tpu.memory_space<vmem>>, %arg4: memref<32x16xbf16, #tpu.memory_space<vmem>>, %arg5: memref<1x16xf32, #tpu.memory_space<vmem>>, %arg6: memref<2x2x32xf32, #tpu.memory_space<vmem>>, %arg7: memref<2x2x32xf32, #tpu.memory_space<vmem>>, %arg8: memref<16x16xf32, #tpu.memory_space<vmem>>, %arg9: memref<2x2x32xf32, #tpu.memory_space<vmem>>, %arg10: memref<2x2x32xf32, #tpu.memory_space<vmem>>, %arg11: memref<8x8x256xf32, #tpu.memory_space<vmem>>, %arg12: memref<8x8x32xf32, #tpu.memory_space<vmem>>, %arg13: memref<2x8x64xf32, #tpu.memory_space<vmem>>) attributes {dimension_semantics = [], scalar_prefetch = 0 : i64, scratch_operands = 3 : i64, tpu.core_type = #tpu.core_type<tc>} {
    %cst = arith.constant 0.000000e+00 : f32
    %0 = vector.broadcast %cst : f32 to vector<2x8x64xf32>
    %c0 = arith.constant 0 : index
    %c0_0 = arith.constant 0 : index
    %c0_1 = arith.constant 0 : index
    %1 = vector.load %arg13[%c0, %c0_0, %c0_1] : memref<2x8x64xf32, #tpu.memory_space<vmem>>, vector<2x8x64xf32>
    tpu.vector_store %arg13[%c0, %c0_0, %c0_1], %0 {strides = array<i32>} : memref<2x8x64xf32, #tpu.memory_space<vmem>>, vector<2x8x64xf32>,
    %c0_2 = arith.constant 0 : index
    %c0_3 = arith.constant 0 : index
    %c0_4 = arith.constant 0 : index
    %2 = vector.load %arg6[%c0_2, %c0_3, %c0_4] : memref<2x2x32xf32, #tpu.memory_space<vmem>>, vector<1x2x32xf32>
    %3 = vector.shape_cast %2 : vector<1x2x32xf32> to vector<2x32xf32>
    %c0_5 = arith.constant 0 : index
    %c0_6 = arith.constant 0 : index
    %c0_7 = arith.constant 0 : index
    %4 = vector.load %arg13[%c0_5, %c0_6, %c0_7] : memref<2x8x64xf32, #tpu.memory_space<vmem>>, vector<1x2x32xf32>
    %5 = vector.shape_cast %4 : vector<1x2x32xf32> to vector<2x32xf32>
    %6 = vector.shape_cast %3 : vector<2x32xf32> to vector<1x2x32xf32>
    tpu.vector_store %arg13[%c0_5, %c0_6, %c0_7], %6 {strides = array<i32>} : memref<2x8x64xf32, #tpu.memory_space<vmem>>, vector<1x2x32xf32>,
    %c1 = arith.constant 1 : index
    %c0_8 = arith.constant 0 : index
    %c0_9 = arith.constant 0 : index
    %7 = vector.load %arg6[%c1, %c0_8, %c0_9] : memref<2x2x32xf32, #tpu.memory_space<vmem>>, vector<1x2x32xf32>
    %8 = vector.shape_cast %7 : vector<1x2x32xf32> to vector<2x32xf32>
    %c0_10 = arith.constant 0 : index
    %c0_11 = arith.constant 0 : index
    %c32 = arith.constant 32 : index
    %9 = vector.load %arg13[%c0_10, %c0_11, %c32] : memref<2x8x64xf32, #tpu.memory_space<vmem>>, vector<1x2x32xf32>
    %10 = vector.shape_cast %9 : vector<1x2x32xf32> to vector<2x32xf32>
    %11 = vector.shape_cast %8 : vector<2x32xf32> to vector<1x2x32xf32>
    tpu.vector_store %arg13[%c0_10, %c0_11, %c32], %11 {strides = array<i32>} : memref<2x8x64xf32, #tpu.memory_space<vmem>>, vector<1x2x32xf32>,
    %c0_12 = arith.constant 0 : index
    %c0_13 = arith.constant 0 : index
    %c0_14 = arith.constant 0 : index
    %12 = vector.load %arg7[%c0_12, %c0_13, %c0_14] : memref<2x2x32xf32, #tpu.memory_space<vmem>>, vector<1x2x32xf32>
    %13 = vector.shape_cast %12 : vector<1x2x32xf32> to vector<2x32xf32>
    %c1_15 = arith.constant 1 : index
    %c0_16 = arith.constant 0 : index
    %c0_17 = arith.constant 0 : index
    %14 = vector.load %arg13[%c1_15, %c0_16, %c0_17] : memref<2x8x64xf32, #tpu.memory_space<vmem>>, vector<1x2x32xf32>
    %15 = vector.shape_cast %14 : vector<1x2x32xf32> to vector<2x32xf32>
    %16 = vector.shape_cast %13 : vector<2x32xf32> to vector<1x2x32xf32>
    tpu.vector_store %arg13[%c1_15, %c0_16, %c0_17], %16 {strides = array<i32>} : memref<2x8x64xf32, #tpu.memory_space<vmem>>, vector<1x2x32xf32>,
    %c1_18 = arith.constant 1 : index
    %c0_19 = arith.constant 0 : index
    %c0_20 = arith.constant 0 : index
    %17 = vector.load %arg7[%c1_18, %c0_19, %c0_20] : memref<2x2x32xf32, #tpu.memory_space<vmem>>, vector<1x2x32xf32>
    %18 = vector.shape_cast %17 : vector<1x2x32xf32> to vector<2x32xf32>
    %c1_21 = arith.constant 1 : index
    %c0_22 = arith.constant 0 : index
    %c32_23 = arith.constant 32 : index
    %19 = vector.load %arg13[%c1_21, %c0_22, %c32_23] : memref<2x8x64xf32, #tpu.memory_space<vmem>>, vector<1x2x32xf32>
    %20 = vector.shape_cast %19 : vector<1x2x32xf32> to vector<2x32xf32>
    %21 = vector.shape_cast %18 : vector<2x32xf32> to vector<1x2x32xf32>
    tpu.vector_store %arg13[%c1_21, %c0_22, %c32_23], %21 {strides = array<i32>} : memref<2x8x64xf32, #tpu.memory_space<vmem>>, vector<1x2x32xf32>,
    %c0_24 = arith.constant 0 : index
    %c0_25 = arith.constant 0 : index
    %c0_26 = arith.constant 0 : index
    %22 = vector.load %arg13[%c0_24, %c0_25, %c0_26] : memref<2x8x64xf32, #tpu.memory_space<vmem>>, vector<1x8x64xf32>
    %23 = vector.shape_cast %22 : vector<1x8x64xf32> to vector<8x64xf32>
    %c1_27 = arith.constant 1 : index
    %c0_28 = arith.constant 0 : index
    %c0_29 = arith.constant 0 : index
    %24 = vector.load %arg13[%c1_27, %c0_28, %c0_29] : memref<2x8x64xf32, #tpu.memory_space<vmem>>, vector<1x8x64xf32>
    %25 = vector.shape_cast %24 : vector<1x8x64xf32> to vector<8x64xf32>
    %cst_30 = arith.constant 0.000000e+00 : f32
    %26 = vector.broadcast %cst_30 : f32 to vector<8x8x256xf32>
    %c0_31 = arith.constant 0 : index
    %c0_32 = arith.constant 0 : index
    %c0_33 = arith.constant 0 : index
    %27 = vector.load %arg11[%c0_31, %c0_32, %c0_33] : memref<8x8x256xf32, #tpu.memory_space<vmem>>, vector<8x8x256xf32>
    tpu.vector_store %arg11[%c0_31, %c0_32, %c0_33], %26 {strides = array<i32>} : memref<8x8x256xf32, #tpu.memory_space<vmem>>, vector<8x8x256xf32>,
    %c0_34 = arith.constant 0 : index
    %c0_35 = arith.constant 0 : index
    %28 = vector.load %arg2[%c0_34, %c0_35] : memref<16x256xbf16, #tpu.memory_space<vmem>>, vector<16x256xbf16>
    %c0_36 = arith.constant 0 : index
    %c0_37 = arith.constant 0 : index
    %29 = vector.load %arg3[%c0_36, %c0_37] : memref<1x256xf32, #tpu.memory_space<vmem>>, vector<1x256xf32>
    %c0_38 = arith.constant 0 : index
    %c0_39 = arith.constant 0 : index
    %c0_40 = arith.constant 0 : index
    %30 = vector.load %arg0[%c0_38, %c0_39, %c0_40] : memref<2x8x16xf32, #tpu.memory_space<vmem>>, vector<1x8x16xf32>
    %31 = vector.shape_cast %30 : vector<1x8x16xf32> to vector<8x16xf32>
    %32 = arith.truncf %31 : vector<8x16xf32> to vector<8x16xbf16>
    %cst_41 = arith.constant dense<0.000000e+00> : vector<8x256xf32>
    %33 = tpu.matmul %32, %28, %cst_41 {dimension_numbers = #tpu.dot_dimension_numbers<[1], [0], [0], [1], [0, 0, 1, 1], [], []>} : vector<8x16xbf16>, vector<16x256xbf16>, vector<8x256xf32> -> vector<8x256xf32>
    %34 = vector.broadcast %29 : vector<1x256xf32> to vector<8x256xf32>
    %35 = arith.addf %33, %34 : vector<8x256xf32>
    %36 = vector.extract_strided_slice %35 {offsets = [0, 0], sizes = [1, 256], strides = [1, 1]} : vector<8x256xf32> to vector<1x256xf32>
    %c0_42 = arith.constant 0 : index
    %c0_43 = arith.constant 0 : index
    %c0_44 = arith.constant 0 : index
    %37 = vector.load %arg11[%c0_42, %c0_43, %c0_44] : memref<8x8x256xf32, #tpu.memory_space<vmem>>, vector<1x1x256xf32>
    %38 = vector.shape_cast %37 : vector<1x1x256xf32> to vector<1x256xf32>
    %39 = vector.shape_cast %36 : vector<1x256xf32> to vector<1x1x256xf32>
    tpu.vector_store %arg11[%c0_42, %c0_43, %c0_44], %39 {strides = array<i32>} : memref<8x8x256xf32, #tpu.memory_space<vmem>>, vector<1x1x256xf32>,
    %40 = vector.extract_strided_slice %35 {offsets = [1, 0], sizes = [1, 256], strides = [1, 1]} : vector<8x256xf32> to vector<1x256xf32>
    %c1_45 = arith.constant 1 : index
    %c0_46 = arith.constant 0 : index
    %c0_47 = arith.constant 0 : index
    %41 = vector.load %arg11[%c1_45, %c0_46, %c0_47] : memref<8x8x256xf32, #tpu.memory_space<vmem>>, vector<1x1x256xf32>
    %42 = vector.shape_cast %41 : vector<1x1x256xf32> to vector<1x256xf32>
    %43 = vector.shape_cast %40 : vector<1x256xf32> to vector<1x1x256xf32>
    tpu.vector_store %arg11[%c1_45, %c0_46, %c0_47], %43 {strides = array<i32>} : memref<8x8x256xf32, #tpu.memory_space<vmem>>, vector<1x1x256xf32>,
    %44 = vector.extract_strided_slice %35 {offsets = [2, 0], sizes = [1, 256], strides = [1, 1]} : vector<8x256xf32> to vector<1x256xf32>
    %c2 = arith.constant 2 : index
    %c0_48 = arith.constant 0 : index
    %c0_49 = arith.constant 0 : index
    %45 = vector.load %arg11[%c2, %c0_48, %c0_49] : memref<8x8x256xf32, #tpu.memory_space<vmem>>, vector<1x1x256xf32>
    %46 = vector.shape_cast %45 : vector<1x1x256xf32> to vector<1x256xf32>
    %47 = vector.shape_cast %44 : vector<1x256xf32> to vector<1x1x256xf32>
    tpu.vector_store %arg11[%c2, %c0_48, %c0_49], %47 {strides = array<i32>} : memref<8x8x256xf32, #tpu.memory_space<vmem>>, vector<1x1x256xf32>,
    %48 = vector.extract_strided_slice %35 {offsets = [3, 0], sizes = [1, 256], strides = [1, 1]} : vector<8x256xf32> to vector<1x256xf32>
    %c3 = arith.constant 3 : index
    %c0_50 = arith.constant 0 : index
    %c0_51 = arith.constant 0 : index
    %49 = vector.load %arg11[%c3, %c0_50, %c0_51] : memref<8x8x256xf32, #tpu.memory_space<vmem>>, vector<1x1x256xf32>
    %50 = vector.shape_cast %49 : vector<1x1x256xf32> to vector<1x256xf32>
    %51 = vector.shape_cast %48 : vector<1x256xf32> to vector<1x1x256xf32>
    tpu.vector_store %arg11[%c3, %c0_50, %c0_51], %51 {strides = array<i32>} : memref<8x8x256xf32, #tpu.memory_space<vmem>>, vector<1x1x256xf32>,
    %52 = vector.extract_strided_slice %35 {offsets = [4, 0], sizes = [1, 256], strides = [1, 1]} : vector<8x256xf32> to vector<1x256xf32>
    %c4 = arith.constant 4 : index
    %c0_52 = arith.constant 0 : index
    %c0_53 = arith.constant 0 : index
    %53 = vector.load %arg11[%c4, %c0_52, %c0_53] : memref<8x8x256xf32, #tpu.memory_space<vmem>>, vector<1x1x256xf32>
    %54 = vector.shape_cast %53 : vector<1x1x256xf32> to vector<1x256xf32>
    %55 = vector.shape_cast %52 : vector<1x256xf32> to vector<1x1x256xf32>
    tpu.vector_store %arg11[%c4, %c0_52, %c0_53], %55 {strides = array<i32>} : memref<8x8x256xf32, #tpu.memory_space<vmem>>, vector<1x1x256xf32>,
    %56 = vector.extract_strided_slice %35 {offsets = [5, 0], sizes = [1, 256], strides = [1, 1]} : vector<8x256xf32> to vector<1x256xf32>
    %c5 = arith.constant 5 : index
    %c0_54 = arith.constant 0 : index
    %c0_55 = arith.constant 0 : index
    %57 = vector.load %arg11[%c5, %c0_54, %c0_55] : memref<8x8x256xf32, #tpu.memory_space<vmem>>, vector<1x1x256xf32>
    %58 = vector.shape_cast %57 : vector<1x1x256xf32> to vector<1x256xf32>
    %59 = vector.shape_cast %56 : vector<1x256xf32> to vector<1x1x256xf32>
    tpu.vector_store %arg11[%c5, %c0_54, %c0_55], %59 {strides = array<i32>} : memref<8x8x256xf32, #tpu.memory_space<vmem>>, vector<1x1x256xf32>,
    %60 = vector.extract_strided_slice %35 {offsets = [6, 0], sizes = [1, 256], strides = [1, 1]} : vector<8x256xf32> to vector<1x256xf32>
    %c6 = arith.constant 6 : index
    %c0_56 = arith.constant 0 : index
    %c0_57 = arith.constant 0 : index
    %61 = vector.load %arg11[%c6, %c0_56, %c0_57] : memref<8x8x256xf32, #tpu.memory_space<vmem>>, vector<1x1x256xf32>
    %62 = vector.shape_cast %61 : vector<1x1x256xf32> to vector<1x256xf32>
    %63 = vector.shape_cast %60 : vector<1x256xf32> to vector<1x1x256xf32>
    tpu.vector_store %arg11[%c6, %c0_56, %c0_57], %63 {strides = array<i32>} : memref<8x8x256xf32, #tpu.memory_space<vmem>>, vector<1x1x256xf32>,
    %64 = vector.extract_strided_slice %35 {offsets = [7, 0], sizes = [1, 256], strides = [1, 1]} : vector<8x256xf32> to vector<1x256xf32>
    %c7 = arith.constant 7 : index
    %c0_58 = arith.constant 0 : index
    %c0_59 = arith.constant 0 : index
    %65 = vector.load %arg11[%c7, %c0_58, %c0_59] : memref<8x8x256xf32, #tpu.memory_space<vmem>>, vector<1x1x256xf32>
    %66 = vector.shape_cast %65 : vector<1x1x256xf32> to vector<1x256xf32>
    %67 = vector.shape_cast %64 : vector<1x256xf32> to vector<1x1x256xf32>
    tpu.vector_store %arg11[%c7, %c0_58, %c0_59], %67 {strides = array<i32>} : memref<8x8x256xf32, #tpu.memory_space<vmem>>, vector<1x1x256xf32>,
    %c1_60 = arith.constant 1 : index
    %c0_61 = arith.constant 0 : index
    %c0_62 = arith.constant 0 : index
    %68 = vector.load %arg0[%c1_60, %c0_61, %c0_62] : memref<2x8x16xf32, #tpu.memory_space<vmem>>, vector<1x8x16xf32>
    %69 = vector.shape_cast %68 : vector<1x8x16xf32> to vector<8x16xf32>
    %70 = arith.truncf %69 : vector<8x16xf32> to vector<8x16xbf16>
    %cst_63 = arith.constant dense<0.000000e+00> : vector<8x256xf32>
    %71 = tpu.matmul %70, %28, %cst_63 {dimension_numbers = #tpu.dot_dimension_numbers<[1], [0], [0], [1], [0, 0, 1, 1], [], []>} : vector<8x16xbf16>, vector<16x256xbf16>, vector<8x256xf32> -> vector<8x256xf32>
    %72 = vector.broadcast %29 : vector<1x256xf32> to vector<8x256xf32>
    %73 = arith.addf %71, %72 : vector<8x256xf32>
    %74 = vector.extract_strided_slice %73 {offsets = [0, 0], sizes = [1, 256], strides = [1, 1]} : vector<8x256xf32> to vector<1x256xf32>
    %c0_64 = arith.constant 0 : index
    %c1_65 = arith.constant 1 : index
    %c0_66 = arith.constant 0 : index
    %75 = vector.load %arg11[%c0_64, %c1_65, %c0_66] : memref<8x8x256xf32, #tpu.memory_space<vmem>>, vector<1x1x256xf32>
    %76 = vector.shape_cast %75 : vector<1x1x256xf32> to vector<1x256xf32>
    %77 = vector.shape_cast %74 : vector<1x256xf32> to vector<1x1x256xf32>
    tpu.vector_store %arg11[%c0_64, %c1_65, %c0_66], %77 {strides = array<i32>} : memref<8x8x256xf32, #tpu.memory_space<vmem>>, vector<1x1x256xf32>,
    %78 = vector.extract_strided_slice %73 {offsets = [1, 0], sizes = [1, 256], strides = [1, 1]} : vector<8x256xf32> to vector<1x256xf32>
    %c1_67 = arith.constant 1 : index
    %c1_68 = arith.constant 1 : index
    %c0_69 = arith.constant 0 : index
    %79 = vector.load %arg11[%c1_67, %c1_68, %c0_69] : memref<8x8x256xf32, #tpu.memory_space<vmem>>, vector<1x1x256xf32>
    %80 = vector.shape_cast %79 : vector<1x1x256xf32> to vector<1x256xf32>
    %81 = vector.shape_cast %78 : vector<1x256xf32> to vector<1x1x256xf32>
    tpu.vector_store %arg11[%c1_67, %c1_68, %c0_69], %81 {strides = array<i32>} : memref<8x8x256xf32, #tpu.memory_space<vmem>>, vector<1x1x256xf32>,
    %82 = vector.extract_strided_slice %73 {offsets = [2, 0], sizes = [1, 256], strides = [1, 1]} : vector<8x256xf32> to vector<1x256xf32>
    %c2_70 = arith.constant 2 : index
    %c1_71 = arith.constant 1 : index
    %c0_72 = arith.constant 0 : index
    %83 = vector.load %arg11[%c2_70, %c1_71, %c0_72] : memref<8x8x256xf32, #tpu.memory_space<vmem>>, vector<1x1x256xf32>
    %84 = vector.shape_cast %83 : vector<1x1x256xf32> to vector<1x256xf32>
    %85 = vector.shape_cast %82 : vector<1x256xf32> to vector<1x1x256xf32>
    tpu.vector_store %arg11[%c2_70, %c1_71, %c0_72], %85 {strides = array<i32>} : memref<8x8x256xf32, #tpu.memory_space<vmem>>, vector<1x1x256xf32>,
    %86 = vector.extract_strided_slice %73 {offsets = [3, 0], sizes = [1, 256], strides = [1, 1]} : vector<8x256xf32> to vector<1x256xf32>
    %c3_73 = arith.constant 3 : index
    %c1_74 = arith.constant 1 : index
    %c0_75 = arith.constant 0 : index
    %87 = vector.load %arg11[%c3_73, %c1_74, %c0_75] : memref<8x8x256xf32, #tpu.memory_space<vmem>>, vector<1x1x256xf32>
    %88 = vector.shape_cast %87 : vector<1x1x256xf32> to vector<1x256xf32>
    %89 = vector.shape_cast %86 : vector<1x256xf32> to vector<1x1x256xf32>
    tpu.vector_store %arg11[%c3_73, %c1_74, %c0_75], %89 {strides = array<i32>} : memref<8x8x256xf32, #tpu.memory_space<vmem>>, vector<1x1x256xf32>,
    %90 = vector.extract_strided_slice %73 {offsets = [4, 0], sizes = [1, 256], strides = [1, 1]} : vector<8x256xf32> to vector<1x256xf32>
    %c4_76 = arith.constant 4 : index
    %c1_77 = arith.constant 1 : index
    %c0_78 = arith.constant 0 : index
    %91 = vector.load %arg11[%c4_76, %c1_77, %c0_78] : memref<8x8x256xf32, #tpu.memory_space<vmem>>, vector<1x1x256xf32>
    %92 = vector.shape_cast %91 : vector<1x1x256xf32> to vector<1x256xf32>
    %93 = vector.shape_cast %90 : vector<1x256xf32> to vector<1x1x256xf32>
    tpu.vector_store %arg11[%c4_76, %c1_77, %c0_78], %93 {strides = array<i32>} : memref<8x8x256xf32, #tpu.memory_space<vmem>>, vector<1x1x256xf32>,
    %94 = vector.extract_strided_slice %73 {offsets = [5, 0], sizes = [1, 256], strides = [1, 1]} : vector<8x256xf32> to vector<1x256xf32>
    %c5_79 = arith.constant 5 : index
    %c1_80 = arith.constant 1 : index
    %c0_81 = arith.constant 0 : index
    %95 = vector.load %arg11[%c5_79, %c1_80, %c0_81] : memref<8x8x256xf32, #tpu.memory_space<vmem>>, vector<1x1x256xf32>
    %96 = vector.shape_cast %95 : vector<1x1x256xf32> to vector<1x256xf32>
    %97 = vector.shape_cast %94 : vector<1x256xf32> to vector<1x1x256xf32>
    tpu.vector_store %arg11[%c5_79, %c1_80, %c0_81], %97 {strides = array<i32>} : memref<8x8x256xf32, #tpu.memory_space<vmem>>, vector<1x1x256xf32>,
    %98 = vector.extract_strided_slice %73 {offsets = [6, 0], sizes = [1, 256], strides = [1, 1]} : vector<8x256xf32> to vector<1x256xf32>
    %c6_82 = arith.constant 6 : index
    %c1_83 = arith.constant 1 : index
    %c0_84 = arith.constant 0 : index
    %99 = vector.load %arg11[%c6_82, %c1_83, %c0_84] : memref<8x8x256xf32, #tpu.memory_space<vmem>>, vector<1x1x256xf32>
    %100 = vector.shape_cast %99 : vector<1x1x256xf32> to vector<1x256xf32>
    %101 = vector.shape_cast %98 : vector<1x256xf32> to vector<1x1x256xf32>
    tpu.vector_store %arg11[%c6_82, %c1_83, %c0_84], %101 {strides = array<i32>} : memref<8x8x256xf32, #tpu.memory_space<vmem>>, vector<1x1x256xf32>,
    %102 = vector.extract_strided_slice %73 {offsets = [7, 0], sizes = [1, 256], strides = [1, 1]} : vector<8x256xf32> to vector<1x256xf32>
    %c7_85 = arith.constant 7 : index
    %c1_86 = arith.constant 1 : index
    %c0_87 = arith.constant 0 : index
    %103 = vector.load %arg11[%c7_85, %c1_86, %c0_87] : memref<8x8x256xf32, #tpu.memory_space<vmem>>, vector<1x1x256xf32>
    %104 = vector.shape_cast %103 : vector<1x1x256xf32> to vector<1x256xf32>
    %105 = vector.shape_cast %102 : vector<1x256xf32> to vector<1x1x256xf32>
    tpu.vector_store %arg11[%c7_85, %c1_86, %c0_87], %105 {strides = array<i32>} : memref<8x8x256xf32, #tpu.memory_space<vmem>>, vector<1x1x256xf32>,
    %c0_88 = arith.constant 0 : index
    %c0_89 = arith.constant 0 : index
    %106 = vector.load %arg1[%c0_88, %c0_89] : memref<64x256xbf16, #tpu.memory_space<vmem>>, vector<64x256xbf16>
    %107 = tpu.iota {dimensions = array<i32: 1>} : vector<8x256xi32>
    %c128_i32 = arith.constant 128 : i32
    %108 = vector.broadcast %c128_i32 : i32 to vector<8x256xi32>
    %109 = arith.cmpi sge, %107, %108 : vector<8x256xi32>
    %c192_i32 = arith.constant 192 : i32
    %110 = vector.broadcast %c192_i32 : i32 to vector<8x256xi32>
    %111 = arith.cmpi slt, %107, %110 : vector<8x256xi32>
    %112 = arith.andi %109, %111 : vector<8x256xi1>
    %113 = tpu.iota {dimensions = array<i32: 1>} : vector<8x64xi32>
    %c32_i32 = arith.constant 32 : i32
    %114 = vector.broadcast %c32_i32 : i32 to vector<8x64xi32>
    %115 = arith.cmpi slt, %113, %114 : vector<8x64xi32>
    %c0_90 = arith.constant 0 : index
    %c0_91 = arith.constant 0 : index
    %c0_92 = arith.constant 0 : index
    %116 = vector.load %arg11[%c0_90, %c0_91, %c0_92] : memref<8x8x256xf32, #tpu.memory_space<vmem>>, vector<1x8x256xf32>
    %117 = vector.shape_cast %116 : vector<1x8x256xf32> to vector<8x256xf32>
    %118 = arith.truncf %23 : vector<8x64xf32> to vector<8x64xbf16>
    %cst_93 = arith.constant dense<0.000000e+00> : vector<8x256xf32>
    %119 = tpu.matmul %118, %106, %cst_93 {dimension_numbers = #tpu.dot_dimension_numbers<[1], [0], [0], [1], [0, 0, 1, 1], [], []>} : vector<8x64xbf16>, vector<64x256xbf16>, vector<8x256xf32> -> vector<8x256xf32>
    %120 = arith.addf %119, %117 : vector<8x256xf32>
    %121 = math.tanh %120 : vector<8x256xf32>
    %122 = arith.negf %120 : vector<8x256xf32>
    %123 = math.exp %122 : vector<8x256xf32>
    %cst_94 = arith.constant 1.000000e+00 : f32
    %124 = vector.broadcast %cst_94 : f32 to vector<8x256xf32>
    %125 = arith.addf %124, %123 : vector<8x256xf32>
    %126 = arith.divf %124, %125 : vector<8x256xf32>
    %127 = arith.select %112, %121, %126 : vector<8x256xi1>, vector<8x256xf32>
    %128 = vector.extract_strided_slice %127 {offsets = [0, 0], sizes = [8, 64], strides = [1, 1]} : vector<8x256xf32> to vector<8x64xf32>
    %129 = vector.extract_strided_slice %127 {offsets = [0, 64], sizes = [8, 64], strides = [1, 1]} : vector<8x256xf32> to vector<8x64xf32>
    %130 = vector.extract_strided_slice %127 {offsets = [0, 128], sizes = [8, 64], strides = [1, 1]} : vector<8x256xf32> to vector<8x64xf32>
    %131 = vector.extract_strided_slice %127 {offsets = [0, 192], sizes = [8, 64], strides = [1, 1]} : vector<8x256xf32> to vector<8x64xf32>
    %132 = arith.mulf %129, %25 : vector<8x64xf32>
    %133 = arith.mulf %128, %130 : vector<8x64xf32>
    %134 = arith.addf %132, %133 : vector<8x64xf32>
    %135 = math.tanh %134 : vector<8x64xf32>
    %136 = arith.mulf %131, %135 : vector<8x64xf32>
    %137 = arith.select %115, %136, %23 : vector<8x64xi1>, vector<8x64xf32>
    %138 = arith.select %115, %134, %25 : vector<8x64xi1>, vector<8x64xf32>
    %c1_i32 = arith.constant 1 : i32
    %139 = arith.index_cast %c1_i32 : i32 to index
    %c0_95 = arith.constant 0 : index
    %c0_96 = arith.constant 0 : index
    %140 = vector.load %arg11[%139, %c0_95, %c0_96] : memref<8x8x256xf32, #tpu.memory_space<vmem>>, vector<1x8x256xf32>
    %141 = vector.shape_cast %140 : vector<1x8x256xf32> to vector<8x256xf32>
    %142 = arith.truncf %137 : vector<8x64xf32> to vector<8x64xbf16>
    %cst_97 = arith.constant dense<0.000000e+00> : vector<8x256xf32>
    %143 = tpu.matmul %142, %106, %cst_97 {dimension_numbers = #tpu.dot_dimension_numbers<[1], [0], [0], [1], [0, 0, 1, 1], [], []>} : vector<8x64xbf16>, vector<64x256xbf16>, vector<8x256xf32> -> vector<8x256xf32>
    %144 = arith.addf %143, %141 : vector<8x256xf32>
    %145 = math.tanh %144 : vector<8x256xf32>
    %146 = arith.negf %144 : vector<8x256xf32>
    %147 = math.exp %146 : vector<8x256xf32>
    %cst_98 = arith.constant 1.000000e+00 : f32
    %148 = vector.broadcast %cst_98 : f32 to vector<8x256xf32>
    %149 = arith.addf %148, %147 : vector<8x256xf32>
    %150 = arith.divf %148, %149 : vector<8x256xf32>
    %151 = arith.select %112, %145, %150 : vector<8x256xi1>, vector<8x256xf32>
    %152 = vector.extract_strided_slice %151 {offsets = [0, 0], sizes = [8, 64], strides = [1, 1]} : vector<8x256xf32> to vector<8x64xf32>
    %153 = vector.extract_strided_slice %151 {offsets = [0, 64], sizes = [8, 64], strides = [1, 1]} : vector<8x256xf32> to vector<8x64xf32>
    %154 = vector.extract_strided_slice %151 {offsets = [0, 128], sizes = [8, 64], strides = [1, 1]} : vector<8x256xf32> to vector<8x64xf32>
    %155 = vector.extract_strided_slice %151 {offsets = [0, 192], sizes = [8, 64], strides = [1, 1]} : vector<8x256xf32> to vector<8x64xf32>
    %156 = arith.mulf %153, %138 : vector<8x64xf32>
    %157 = arith.mulf %152, %154 : vector<8x64xf32>
    %158 = arith.addf %156, %157 : vector<8x64xf32>
    %159 = math.tanh %158 : vector<8x64xf32>
    %160 = arith.mulf %155, %159 : vector<8x64xf32>
    %161 = vector.extract_strided_slice %160 {offsets = [0, 32], sizes = [8, 32], strides = [1, 1]} : vector<8x64xf32> to vector<8x32xf32>
    %c1_i32_99 = arith.constant 1 : i32
    %162 = arith.subi %c1_i32, %c1_i32_99 : i32
    %163 = arith.index_cast %162 : i32 to index
    %c0_100 = arith.constant 0 : index
    %c0_101 = arith.constant 0 : index
    %164 = vector.load %arg12[%163, %c0_100, %c0_101] : memref<8x8x32xf32, #tpu.memory_space<vmem>>, vector<1x8x32xf32>
    %165 = vector.shape_cast %164 : vector<1x8x32xf32> to vector<8x32xf32>
    %166 = vector.shape_cast %161 : vector<8x32xf32> to vector<1x8x32xf32>
    tpu.vector_store %arg12[%163, %c0_100, %c0_101], %166 {strides = array<i32>} : memref<8x8x32xf32, #tpu.memory_space<vmem>>, vector<1x8x32xf32>,
    %c2_i32 = arith.constant 2 : i32
    %167 = arith.index_cast %c2_i32 : i32 to index
    %c0_102 = arith.constant 0 : index
    %c0_103 = arith.constant 0 : index
    %168 = vector.load %arg11[%167, %c0_102, %c0_103] : memref<8x8x256xf32, #tpu.memory_space<vmem>>, vector<1x8x256xf32>
    %169 = vector.shape_cast %168 : vector<1x8x256xf32> to vector<8x256xf32>
    %170 = arith.truncf %160 : vector<8x64xf32> to vector<8x64xbf16>
    %cst_104 = arith.constant dense<0.000000e+00> : vector<8x256xf32>
    %171 = tpu.matmul %170, %106, %cst_104 {dimension_numbers = #tpu.dot_dimension_numbers<[1], [0], [0], [1], [0, 0, 1, 1], [], []>} : vector<8x64xbf16>, vector<64x256xbf16>, vector<8x256xf32> -> vector<8x256xf32>
    %172 = arith.addf %171, %169 : vector<8x256xf32>
    %173 = math.tanh %172 : vector<8x256xf32>
    %174 = arith.negf %172 : vector<8x256xf32>
    %175 = math.exp %174 : vector<8x256xf32>
    %cst_105 = arith.constant 1.000000e+00 : f32
    %176 = vector.broadcast %cst_105 : f32 to vector<8x256xf32>
    %177 = arith.addf %176, %175 : vector<8x256xf32>
    %178 = arith.divf %176, %177 : vector<8x256xf32>
    %179 = arith.select %112, %173, %178 : vector<8x256xi1>, vector<8x256xf32>
    %180 = vector.extract_strided_slice %179 {offsets = [0, 0], sizes = [8, 64], strides = [1, 1]} : vector<8x256xf32> to vector<8x64xf32>
    %181 = vector.extract_strided_slice %179 {offsets = [0, 64], sizes = [8, 64], strides = [1, 1]} : vector<8x256xf32> to vector<8x64xf32>
    %182 = vector.extract_strided_slice %179 {offsets = [0, 128], sizes = [8, 64], strides = [1, 1]} : vector<8x256xf32> to vector<8x64xf32>
    %183 = vector.extract_strided_slice %179 {offsets = [0, 192], sizes = [8, 64], strides = [1, 1]} : vector<8x256xf32> to vector<8x64xf32>
    %184 = arith.mulf %181, %158 : vector<8x64xf32>
    %185 = arith.mulf %180, %182 : vector<8x64xf32>
    %186 = arith.addf %184, %185 : vector<8x64xf32>
    %187 = math.tanh %186 : vector<8x64xf32>
    %188 = arith.mulf %183, %187 : vector<8x64xf32>
    %189 = vector.extract_strided_slice %188 {offsets = [0, 32], sizes = [8, 32], strides = [1, 1]} : vector<8x64xf32> to vector<8x32xf32>
    %c1_i32_106 = arith.constant 1 : i32
    %190 = arith.subi %c2_i32, %c1_i32_106 : i32
    %191 = arith.index_cast %190 : i32 to index
    %c0_107 = arith.constant 0 : index
    %c0_108 = arith.constant 0 : index
    %192 = vector.load %arg12[%191, %c0_107, %c0_108] : memref<8x8x32xf32, #tpu.memory_space<vmem>>, vector<1x8x32xf32>
    %193 = vector.shape_cast %192 : vector<1x8x32xf32> to vector<8x32xf32>
    %194 = vector.shape_cast %189 : vector<8x32xf32> to vector<1x8x32xf32>
    tpu.vector_store %arg12[%191, %c0_107, %c0_108], %194 {strides = array<i32>} : memref<8x8x32xf32, #tpu.memory_space<vmem>>, vector<1x8x32xf32>,
    %c3_i32 = arith.constant 3 : i32
    %195 = arith.index_cast %c3_i32 : i32 to index
    %c0_109 = arith.constant 0 : index
    %c0_110 = arith.constant 0 : index
    %196 = vector.load %arg11[%195, %c0_109, %c0_110] : memref<8x8x256xf32, #tpu.memory_space<vmem>>, vector<1x8x256xf32>
    %197 = vector.shape_cast %196 : vector<1x8x256xf32> to vector<8x256xf32>
    %198 = arith.truncf %188 : vector<8x64xf32> to vector<8x64xbf16>
    %cst_111 = arith.constant dense<0.000000e+00> : vector<8x256xf32>
    %199 = tpu.matmul %198, %106, %cst_111 {dimension_numbers = #tpu.dot_dimension_numbers<[1], [0], [0], [1], [0, 0, 1, 1], [], []>} : vector<8x64xbf16>, vector<64x256xbf16>, vector<8x256xf32> -> vector<8x256xf32>
    %200 = arith.addf %199, %197 : vector<8x256xf32>
    %201 = math.tanh %200 : vector<8x256xf32>
    %202 = arith.negf %200 : vector<8x256xf32>
    %203 = math.exp %202 : vector<8x256xf32>
    %cst_112 = arith.constant 1.000000e+00 : f32
    %204 = vector.broadcast %cst_112 : f32 to vector<8x256xf32>
    %205 = arith.addf %204, %203 : vector<8x256xf32>
    %206 = arith.divf %204, %205 : vector<8x256xf32>
    %207 = arith.select %112, %201, %206 : vector<8x256xi1>, vector<8x256xf32>
    %208 = vector.extract_strided_slice %207 {offsets = [0, 0], sizes = [8, 64], strides = [1, 1]} : vector<8x256xf32> to vector<8x64xf32>
    %209 = vector.extract_strided_slice %207 {offsets = [0, 64], sizes = [8, 64], strides = [1, 1]} : vector<8x256xf32> to vector<8x64xf32>
    %210 = vector.extract_strided_slice %207 {offsets = [0, 128], sizes = [8, 64], strides = [1, 1]} : vector<8x256xf32> to vector<8x64xf32>
    %211 = vector.extract_strided_slice %207 {offsets = [0, 192], sizes = [8, 64], strides = [1, 1]} : vector<8x256xf32> to vector<8x64xf32>
    %212 = arith.mulf %209, %186 : vector<8x64xf32>
    %213 = arith.mulf %208, %210 : vector<8x64xf32>
    %214 = arith.addf %212, %213 : vector<8x64xf32>
    %215 = math.tanh %214 : vector<8x64xf32>
    %216 = arith.mulf %211, %215 : vector<8x64xf32>
    %217 = vector.extract_strided_slice %216 {offsets = [0, 32], sizes = [8, 32], strides = [1, 1]} : vector<8x64xf32> to vector<8x32xf32>
    %c1_i32_113 = arith.constant 1 : i32
    %218 = arith.subi %c3_i32, %c1_i32_113 : i32
    %219 = arith.index_cast %218 : i32 to index
    %c0_114 = arith.constant 0 : index
    %c0_115 = arith.constant 0 : index
    %220 = vector.load %arg12[%219, %c0_114, %c0_115] : memref<8x8x32xf32, #tpu.memory_space<vmem>>, vector<1x8x32xf32>
    %221 = vector.shape_cast %220 : vector<1x8x32xf32> to vector<8x32xf32>
    %222 = vector.shape_cast %217 : vector<8x32xf32> to vector<1x8x32xf32>
    tpu.vector_store %arg12[%219, %c0_114, %c0_115], %222 {strides = array<i32>} : memref<8x8x32xf32, #tpu.memory_space<vmem>>, vector<1x8x32xf32>,
    %c4_i32 = arith.constant 4 : i32
    %223 = arith.index_cast %c4_i32 : i32 to index
    %c0_116 = arith.constant 0 : index
    %c0_117 = arith.constant 0 : index
    %224 = vector.load %arg11[%223, %c0_116, %c0_117] : memref<8x8x256xf32, #tpu.memory_space<vmem>>, vector<1x8x256xf32>
    %225 = vector.shape_cast %224 : vector<1x8x256xf32> to vector<8x256xf32>
    %226 = arith.truncf %216 : vector<8x64xf32> to vector<8x64xbf16>
    %cst_118 = arith.constant dense<0.000000e+00> : vector<8x256xf32>
    %227 = tpu.matmul %226, %106, %cst_118 {dimension_numbers = #tpu.dot_dimension_numbers<[1], [0], [0], [1], [0, 0, 1, 1], [], []>} : vector<8x64xbf16>, vector<64x256xbf16>, vector<8x256xf32> -> vector<8x256xf32>
    %228 = arith.addf %227, %225 : vector<8x256xf32>
    %229 = math.tanh %228 : vector<8x256xf32>
    %230 = arith.negf %228 : vector<8x256xf32>
    %231 = math.exp %230 : vector<8x256xf32>
    %cst_119 = arith.constant 1.000000e+00 : f32
    %232 = vector.broadcast %cst_119 : f32 to vector<8x256xf32>
    %233 = arith.addf %232, %231 : vector<8x256xf32>
    %234 = arith.divf %232, %233 : vector<8x256xf32>
    %235 = arith.select %112, %229, %234 : vector<8x256xi1>, vector<8x256xf32>
    %236 = vector.extract_strided_slice %235 {offsets = [0, 0], sizes = [8, 64], strides = [1, 1]} : vector<8x256xf32> to vector<8x64xf32>
    %237 = vector.extract_strided_slice %235 {offsets = [0, 64], sizes = [8, 64], strides = [1, 1]} : vector<8x256xf32> to vector<8x64xf32>
    %238 = vector.extract_strided_slice %235 {offsets = [0, 128], sizes = [8, 64], strides = [1, 1]} : vector<8x256xf32> to vector<8x64xf32>
    %239 = vector.extract_strided_slice %235 {offsets = [0, 192], sizes = [8, 64], strides = [1, 1]} : vector<8x256xf32> to vector<8x64xf32>
    %240 = arith.mulf %237, %214 : vector<8x64xf32>
    %241 = arith.mulf %236, %238 : vector<8x64xf32>
    %242 = arith.addf %240, %241 : vector<8x64xf32>
    %243 = math.tanh %242 : vector<8x64xf32>
    %244 = arith.mulf %239, %243 : vector<8x64xf32>
    %245 = vector.extract_strided_slice %244 {offsets = [0, 32], sizes = [8, 32], strides = [1, 1]} : vector<8x64xf32> to vector<8x32xf32>
    %c1_i32_120 = arith.constant 1 : i32
    %246 = arith.subi %c4_i32, %c1_i32_120 : i32
    %247 = arith.index_cast %246 : i32 to index
    %c0_121 = arith.constant 0 : index
    %c0_122 = arith.constant 0 : index
    %248 = vector.load %arg12[%247, %c0_121, %c0_122] : memref<8x8x32xf32, #tpu.memory_space<vmem>>, vector<1x8x32xf32>
    %249 = vector.shape_cast %248 : vector<1x8x32xf32> to vector<8x32xf32>
    %250 = vector.shape_cast %245 : vector<8x32xf32> to vector<1x8x32xf32>
    tpu.vector_store %arg12[%247, %c0_121, %c0_122], %250 {strides = array<i32>} : memref<8x8x32xf32, #tpu.memory_space<vmem>>, vector<1x8x32xf32>,
    %c5_i32 = arith.constant 5 : i32
    %251 = arith.index_cast %c5_i32 : i32 to index
    %c0_123 = arith.constant 0 : index
    %c0_124 = arith.constant 0 : index
    %252 = vector.load %arg11[%251, %c0_123, %c0_124] : memref<8x8x256xf32, #tpu.memory_space<vmem>>, vector<1x8x256xf32>
    %253 = vector.shape_cast %252 : vector<1x8x256xf32> to vector<8x256xf32>
    %254 = arith.truncf %244 : vector<8x64xf32> to vector<8x64xbf16>
    %cst_125 = arith.constant dense<0.000000e+00> : vector<8x256xf32>
    %255 = tpu.matmul %254, %106, %cst_125 {dimension_numbers = #tpu.dot_dimension_numbers<[1], [0], [0], [1], [0, 0, 1, 1], [], []>} : vector<8x64xbf16>, vector<64x256xbf16>, vector<8x256xf32> -> vector<8x256xf32>
    %256 = arith.addf %255, %253 : vector<8x256xf32>
    %257 = math.tanh %256 : vector<8x256xf32>
    %258 = arith.negf %256 : vector<8x256xf32>
    %259 = math.exp %258 : vector<8x256xf32>
    %cst_126 = arith.constant 1.000000e+00 : f32
    %260 = vector.broadcast %cst_126 : f32 to vector<8x256xf32>
    %261 = arith.addf %260, %259 : vector<8x256xf32>
    %262 = arith.divf %260, %261 : vector<8x256xf32>
    %263 = arith.select %112, %257, %262 : vector<8x256xi1>, vector<8x256xf32>
    %264 = vector.extract_strided_slice %263 {offsets = [0, 0], sizes = [8, 64], strides = [1, 1]} : vector<8x256xf32> to vector<8x64xf32>
    %265 = vector.extract_strided_slice %263 {offsets = [0, 64], sizes = [8, 64], strides = [1, 1]} : vector<8x256xf32> to vector<8x64xf32>
    %266 = vector.extract_strided_slice %263 {offsets = [0, 128], sizes = [8, 64], strides = [1, 1]} : vector<8x256xf32> to vector<8x64xf32>
    %267 = vector.extract_strided_slice %263 {offsets = [0, 192], sizes = [8, 64], strides = [1, 1]} : vector<8x256xf32> to vector<8x64xf32>
    %268 = arith.mulf %265, %242 : vector<8x64xf32>
    %269 = arith.mulf %264, %266 : vector<8x64xf32>
    %270 = arith.addf %268, %269 : vector<8x64xf32>
    %271 = math.tanh %270 : vector<8x64xf32>
    %272 = arith.mulf %267, %271 : vector<8x64xf32>
    %273 = vector.extract_strided_slice %272 {offsets = [0, 32], sizes = [8, 32], strides = [1, 1]} : vector<8x64xf32> to vector<8x32xf32>
    %c1_i32_127 = arith.constant 1 : i32
    %274 = arith.subi %c5_i32, %c1_i32_127 : i32
    %275 = arith.index_cast %274 : i32 to index
    %c0_128 = arith.constant 0 : index
    %c0_129 = arith.constant 0 : index
    %276 = vector.load %arg12[%275, %c0_128, %c0_129] : memref<8x8x32xf32, #tpu.memory_space<vmem>>, vector<1x8x32xf32>
    %277 = vector.shape_cast %276 : vector<1x8x32xf32> to vector<8x32xf32>
    %278 = vector.shape_cast %273 : vector<8x32xf32> to vector<1x8x32xf32>
    tpu.vector_store %arg12[%275, %c0_128, %c0_129], %278 {strides = array<i32>} : memref<8x8x32xf32, #tpu.memory_space<vmem>>, vector<1x8x32xf32>,
    %c6_i32 = arith.constant 6 : i32
    %279 = arith.index_cast %c6_i32 : i32 to index
    %c0_130 = arith.constant 0 : index
    %c0_131 = arith.constant 0 : index
    %280 = vector.load %arg11[%279, %c0_130, %c0_131] : memref<8x8x256xf32, #tpu.memory_space<vmem>>, vector<1x8x256xf32>
    %281 = vector.shape_cast %280 : vector<1x8x256xf32> to vector<8x256xf32>
    %282 = arith.truncf %272 : vector<8x64xf32> to vector<8x64xbf16>
    %cst_132 = arith.constant dense<0.000000e+00> : vector<8x256xf32>
    %283 = tpu.matmul %282, %106, %cst_132 {dimension_numbers = #tpu.dot_dimension_numbers<[1], [0], [0], [1], [0, 0, 1, 1], [], []>} : vector<8x64xbf16>, vector<64x256xbf16>, vector<8x256xf32> -> vector<8x256xf32>
    %284 = arith.addf %283, %281 : vector<8x256xf32>
    %285 = math.tanh %284 : vector<8x256xf32>
    %286 = arith.negf %284 : vector<8x256xf32>
    %287 = math.exp %286 : vector<8x256xf32>
    %cst_133 = arith.constant 1.000000e+00 : f32
    %288 = vector.broadcast %cst_133 : f32 to vector<8x256xf32>
    %289 = arith.addf %288, %287 : vector<8x256xf32>
    %290 = arith.divf %288, %289 : vector<8x256xf32>
    %291 = arith.select %112, %285, %290 : vector<8x256xi1>, vector<8x256xf32>
    %292 = vector.extract_strided_slice %291 {offsets = [0, 0], sizes = [8, 64], strides = [1, 1]} : vector<8x256xf32> to vector<8x64xf32>
    %293 = vector.extract_strided_slice %291 {offsets = [0, 64], sizes = [8, 64], strides = [1, 1]} : vector<8x256xf32> to vector<8x64xf32>
    %294 = vector.extract_strided_slice %291 {offsets = [0, 128], sizes = [8, 64], strides = [1, 1]} : vector<8x256xf32> to vector<8x64xf32>
    %295 = vector.extract_strided_slice %291 {offsets = [0, 192], sizes = [8, 64], strides = [1, 1]} : vector<8x256xf32> to vector<8x64xf32>
    %296 = arith.mulf %293, %270 : vector<8x64xf32>
    %297 = arith.mulf %292, %294 : vector<8x64xf32>
    %298 = arith.addf %296, %297 : vector<8x64xf32>
    %299 = math.tanh %298 : vector<8x64xf32>
    %300 = arith.mulf %295, %299 : vector<8x64xf32>
    %301 = vector.extract_strided_slice %300 {offsets = [0, 32], sizes = [8, 32], strides = [1, 1]} : vector<8x64xf32> to vector<8x32xf32>
    %c1_i32_134 = arith.constant 1 : i32
    %302 = arith.subi %c6_i32, %c1_i32_134 : i32
    %303 = arith.index_cast %302 : i32 to index
    %c0_135 = arith.constant 0 : index
    %c0_136 = arith.constant 0 : index
    %304 = vector.load %arg12[%303, %c0_135, %c0_136] : memref<8x8x32xf32, #tpu.memory_space<vmem>>, vector<1x8x32xf32>
    %305 = vector.shape_cast %304 : vector<1x8x32xf32> to vector<8x32xf32>
    %306 = vector.shape_cast %301 : vector<8x32xf32> to vector<1x8x32xf32>
    tpu.vector_store %arg12[%303, %c0_135, %c0_136], %306 {strides = array<i32>} : memref<8x8x32xf32, #tpu.memory_space<vmem>>, vector<1x8x32xf32>,
    %c7_i32 = arith.constant 7 : i32
    %307 = arith.index_cast %c7_i32 : i32 to index
    %c0_137 = arith.constant 0 : index
    %c0_138 = arith.constant 0 : index
    %308 = vector.load %arg11[%307, %c0_137, %c0_138] : memref<8x8x256xf32, #tpu.memory_space<vmem>>, vector<1x8x256xf32>
    %309 = vector.shape_cast %308 : vector<1x8x256xf32> to vector<8x256xf32>
    %310 = arith.truncf %300 : vector<8x64xf32> to vector<8x64xbf16>
    %cst_139 = arith.constant dense<0.000000e+00> : vector<8x256xf32>
    %311 = tpu.matmul %310, %106, %cst_139 {dimension_numbers = #tpu.dot_dimension_numbers<[1], [0], [0], [1], [0, 0, 1, 1], [], []>} : vector<8x64xbf16>, vector<64x256xbf16>, vector<8x256xf32> -> vector<8x256xf32>
    %312 = arith.addf %311, %309 : vector<8x256xf32>
    %313 = math.tanh %312 : vector<8x256xf32>
    %314 = arith.negf %312 : vector<8x256xf32>
    %315 = math.exp %314 : vector<8x256xf32>
    %cst_140 = arith.constant 1.000000e+00 : f32
    %316 = vector.broadcast %cst_140 : f32 to vector<8x256xf32>
    %317 = arith.addf %316, %315 : vector<8x256xf32>
    %318 = arith.divf %316, %317 : vector<8x256xf32>
    %319 = arith.select %112, %313, %318 : vector<8x256xi1>, vector<8x256xf32>
    %320 = vector.extract_strided_slice %319 {offsets = [0, 0], sizes = [8, 64], strides = [1, 1]} : vector<8x256xf32> to vector<8x64xf32>
    %321 = vector.extract_strided_slice %319 {offsets = [0, 64], sizes = [8, 64], strides = [1, 1]} : vector<8x256xf32> to vector<8x64xf32>
    %322 = vector.extract_strided_slice %319 {offsets = [0, 128], sizes = [8, 64], strides = [1, 1]} : vector<8x256xf32> to vector<8x64xf32>
    %323 = vector.extract_strided_slice %319 {offsets = [0, 192], sizes = [8, 64], strides = [1, 1]} : vector<8x256xf32> to vector<8x64xf32>
    %324 = arith.mulf %321, %298 : vector<8x64xf32>
    %325 = arith.mulf %320, %322 : vector<8x64xf32>
    %326 = arith.addf %324, %325 : vector<8x64xf32>
    %327 = math.tanh %326 : vector<8x64xf32>
    %328 = arith.mulf %323, %327 : vector<8x64xf32>
    %329 = vector.extract_strided_slice %328 {offsets = [0, 32], sizes = [8, 32], strides = [1, 1]} : vector<8x64xf32> to vector<8x32xf32>
    %c1_i32_141 = arith.constant 1 : i32
    %330 = arith.subi %c7_i32, %c1_i32_141 : i32
    %331 = arith.index_cast %330 : i32 to index
    %c0_142 = arith.constant 0 : index
    %c0_143 = arith.constant 0 : index
    %332 = vector.load %arg12[%331, %c0_142, %c0_143] : memref<8x8x32xf32, #tpu.memory_space<vmem>>, vector<1x8x32xf32>
    %333 = vector.shape_cast %332 : vector<1x8x32xf32> to vector<8x32xf32>
    %334 = vector.shape_cast %329 : vector<8x32xf32> to vector<1x8x32xf32>
    tpu.vector_store %arg12[%331, %c0_142, %c0_143], %334 {strides = array<i32>} : memref<8x8x32xf32, #tpu.memory_space<vmem>>, vector<1x8x32xf32>,
    %c7_i32_144 = arith.constant 7 : i32
    %c7_145 = arith.constant 7 : index
    %c0_146 = arith.constant 0 : index
    %c0_147 = arith.constant 0 : index
    %335 = vector.load %arg11[%c7_145, %c0_146, %c0_147] : memref<8x8x256xf32, #tpu.memory_space<vmem>>, vector<1x8x256xf32>
    %336 = vector.shape_cast %335 : vector<1x8x256xf32> to vector<8x256xf32>
    %337 = arith.truncf %328 : vector<8x64xf32> to vector<8x64xbf16>
    %cst_148 = arith.constant dense<0.000000e+00> : vector<8x256xf32>
    %338 = tpu.matmul %337, %106, %cst_148 {dimension_numbers = #tpu.dot_dimension_numbers<[1], [0], [0], [1], [0, 0, 1, 1], [], []>} : vector<8x64xbf16>, vector<64x256xbf16>, vector<8x256xf32> -> vector<8x256xf32>
    %339 = arith.addf %338, %336 : vector<8x256xf32>
    %340 = math.tanh %339 : vector<8x256xf32>
    %341 = arith.negf %339 : vector<8x256xf32>
    %342 = math.exp %341 : vector<8x256xf32>
    %cst_149 = arith.constant 1.000000e+00 : f32
    %343 = vector.broadcast %cst_149 : f32 to vector<8x256xf32>
    %344 = arith.addf %343, %342 : vector<8x256xf32>
    %345 = arith.divf %343, %344 : vector<8x256xf32>
    %346 = arith.select %112, %340, %345 : vector<8x256xi1>, vector<8x256xf32>
    %347 = vector.extract_strided_slice %346 {offsets = [0, 0], sizes = [8, 64], strides = [1, 1]} : vector<8x256xf32> to vector<8x64xf32>
    %348 = vector.extract_strided_slice %346 {offsets = [0, 64], sizes = [8, 64], strides = [1, 1]} : vector<8x256xf32> to vector<8x64xf32>
    %349 = vector.extract_strided_slice %346 {offsets = [0, 128], sizes = [8, 64], strides = [1, 1]} : vector<8x256xf32> to vector<8x64xf32>
    %350 = vector.extract_strided_slice %346 {offsets = [0, 192], sizes = [8, 64], strides = [1, 1]} : vector<8x256xf32> to vector<8x64xf32>
    %351 = arith.mulf %348, %326 : vector<8x64xf32>
    %352 = arith.mulf %347, %349 : vector<8x64xf32>
    %353 = arith.addf %351, %352 : vector<8x64xf32>
    %354 = math.tanh %353 : vector<8x64xf32>
    %355 = arith.mulf %350, %354 : vector<8x64xf32>
    %356 = arith.select %115, %328, %355 : vector<8x64xi1>, vector<8x64xf32>
    %357 = arith.select %115, %326, %353 : vector<8x64xi1>, vector<8x64xf32>
    %358 = vector.extract_strided_slice %355 {offsets = [0, 32], sizes = [8, 32], strides = [1, 1]} : vector<8x64xf32> to vector<8x32xf32>
    %c7_150 = arith.constant 7 : index
    %c0_151 = arith.constant 0 : index
    %c0_152 = arith.constant 0 : index
    %359 = vector.load %arg12[%c7_150, %c0_151, %c0_152] : memref<8x8x32xf32, #tpu.memory_space<vmem>>, vector<1x8x32xf32>
    %360 = vector.shape_cast %359 : vector<1x8x32xf32> to vector<8x32xf32>
    %361 = vector.shape_cast %358 : vector<8x32xf32> to vector<1x8x32xf32>
    tpu.vector_store %arg12[%c7_150, %c0_151, %c0_152], %361 {strides = array<i32>} : memref<8x8x32xf32, #tpu.memory_space<vmem>>, vector<1x8x32xf32>,
    %362 = vector.extract_strided_slice %356 {offsets = [0, 0], sizes = [2, 32], strides = [1, 1]} : vector<8x64xf32> to vector<2x32xf32>
    %c0_153 = arith.constant 0 : index
    %c0_154 = arith.constant 0 : index
    %c0_155 = arith.constant 0 : index
    %363 = vector.load %arg9[%c0_153, %c0_154, %c0_155] : memref<2x2x32xf32, #tpu.memory_space<vmem>>, vector<1x2x32xf32>
    %364 = vector.shape_cast %363 : vector<1x2x32xf32> to vector<2x32xf32>
    %365 = vector.shape_cast %362 : vector<2x32xf32> to vector<1x2x32xf32>
    tpu.vector_store %arg9[%c0_153, %c0_154, %c0_155], %365 {strides = array<i32>} : memref<2x2x32xf32, #tpu.memory_space<vmem>>, vector<1x2x32xf32>,
    %366 = vector.extract_strided_slice %356 {offsets = [0, 32], sizes = [2, 32], strides = [1, 1]} : vector<8x64xf32> to vector<2x32xf32>
    %c1_156 = arith.constant 1 : index
    %c0_157 = arith.constant 0 : index
    %c0_158 = arith.constant 0 : index
    %367 = vector.load %arg9[%c1_156, %c0_157, %c0_158] : memref<2x2x32xf32, #tpu.memory_space<vmem>>, vector<1x2x32xf32>
    %368 = vector.shape_cast %367 : vector<1x2x32xf32> to vector<2x32xf32>
    %369 = vector.shape_cast %366 : vector<2x32xf32> to vector<1x2x32xf32>
    tpu.vector_store %arg9[%c1_156, %c0_157, %c0_158], %369 {strides = array<i32>} : memref<2x2x32xf32, #tpu.memory_space<vmem>>, vector<1x2x32xf32>,
    %370 = vector.extract_strided_slice %357 {offsets = [0, 0], sizes = [2, 32], strides = [1, 1]} : vector<8x64xf32> to vector<2x32xf32>
    %c0_159 = arith.constant 0 : index
    %c0_160 = arith.constant 0 : index
    %c0_161 = arith.constant 0 : index
    %371 = vector.load %arg10[%c0_159, %c0_160, %c0_161] : memref<2x2x32xf32, #tpu.memory_space<vmem>>, vector<1x2x32xf32>
    %372 = vector.shape_cast %371 : vector<1x2x32xf32> to vector<2x32xf32>
    %373 = vector.shape_cast %370 : vector<2x32xf32> to vector<1x2x32xf32>
    tpu.vector_store %arg10[%c0_159, %c0_160, %c0_161], %373 {strides = array<i32>} : memref<2x2x32xf32, #tpu.memory_space<vmem>>, vector<1x2x32xf32>,
    %374 = vector.extract_strided_slice %357 {offsets = [0, 32], sizes = [2, 32], strides = [1, 1]} : vector<8x64xf32> to vector<2x32xf32>
    %c1_162 = arith.constant 1 : index
    %c0_163 = arith.constant 0 : index
    %c0_164 = arith.constant 0 : index
    %375 = vector.load %arg10[%c1_162, %c0_163, %c0_164] : memref<2x2x32xf32, #tpu.memory_space<vmem>>, vector<1x2x32xf32>
    %376 = vector.shape_cast %375 : vector<1x2x32xf32> to vector<2x32xf32>
    %377 = vector.shape_cast %374 : vector<2x32xf32> to vector<1x2x32xf32>
    tpu.vector_store %arg10[%c1_162, %c0_163, %c0_164], %377 {strides = array<i32>} : memref<2x2x32xf32, #tpu.memory_space<vmem>>, vector<1x2x32xf32>,
    %c0_165 = arith.constant 0 : index
    %c0_166 = arith.constant 0 : index
    %378 = vector.load %arg4[%c0_165, %c0_166] : memref<32x16xbf16, #tpu.memory_space<vmem>>, vector<32x16xbf16>
    %c0_167 = arith.constant 0 : index
    %c0_168 = arith.constant 0 : index
    %379 = vector.load %arg5[%c0_167, %c0_168] : memref<1x16xf32, #tpu.memory_space<vmem>>, vector<1x16xf32>
    %c0_169 = arith.constant 0 : index
    %c0_170 = arith.constant 0 : index
    %c0_171 = arith.constant 0 : index
    %380 = vector.load %arg12[%c0_169, %c0_170, %c0_171] : memref<8x8x32xf32, #tpu.memory_space<vmem>>, vector<8x8x32xf32>
    %381 = vector.extract_strided_slice %380 {offsets = [0, 0, 0], sizes = [8, 1, 32], strides = [1, 1, 1]} : vector<8x8x32xf32> to vector<8x1x32xf32>
    %382 = vector.shape_cast %381 : vector<8x1x32xf32> to vector<8x32xf32>
    %383 = arith.truncf %382 : vector<8x32xf32> to vector<8x32xbf16>
    %cst_172 = arith.constant dense<0.000000e+00> : vector<8x16xf32>
    %384 = tpu.matmul %383, %378, %cst_172 {dimension_numbers = #tpu.dot_dimension_numbers<[1], [0], [0], [1], [0, 0, 1, 1], [], []>} : vector<8x32xbf16>, vector<32x16xbf16>, vector<8x16xf32> -> vector<8x16xf32>
    %385 = vector.broadcast %379 : vector<1x16xf32> to vector<8x16xf32>
    %386 = arith.addf %384, %385 : vector<8x16xf32>
    %c0_173 = arith.constant 0 : index
    %c0_174 = arith.constant 0 : index
    %387 = vector.load %arg8[%c0_173, %c0_174] : memref<16x16xf32, #tpu.memory_space<vmem>>, vector<8x16xf32>
    tpu.vector_store %arg8[%c0_173, %c0_174], %386 {strides = array<i32>} : memref<16x16xf32, #tpu.memory_space<vmem>>, vector<8x16xf32>,
    %388 = vector.extract_strided_slice %380 {offsets = [0, 1, 0], sizes = [8, 1, 32], strides = [1, 1, 1]} : vector<8x8x32xf32> to vector<8x1x32xf32>
    %389 = vector.shape_cast %388 : vector<8x1x32xf32> to vector<8x32xf32>
    %390 = arith.truncf %389 : vector<8x32xf32> to vector<8x32xbf16>
    %cst_175 = arith.constant dense<0.000000e+00> : vector<8x16xf32>
    %391 = tpu.matmul %390, %378, %cst_175 {dimension_numbers = #tpu.dot_dimension_numbers<[1], [0], [0], [1], [0, 0, 1, 1], [], []>} : vector<8x32xbf16>, vector<32x16xbf16>, vector<8x16xf32> -> vector<8x16xf32>
    %392 = vector.broadcast %379 : vector<1x16xf32> to vector<8x16xf32>
    %393 = arith.addf %391, %392 : vector<8x16xf32>
    %c8 = arith.constant 8 : index
    %c0_176 = arith.constant 0 : index
    %394 = vector.load %arg8[%c8, %c0_176] : memref<16x16xf32, #tpu.memory_space<vmem>>, vector<8x16xf32>
    tpu.vector_store %arg8[%c8, %c0_176], %393 {strides = array<i32>} : memref<16x16xf32, #tpu.memory_space<vmem>>, vector<8x16xf32>,
    return
  }
}

</mosaic_0001>

<bundles_post_ra>
// kernel: forward.1
= control target key start
LH: loop header
LB: loop body
LE: loop exit
PB: predicated region body
PF: predicated region fallthrough
CT: control target
= control target key end

     0   :  { %16 = vsyncpa [#allocation6], 0  ;;  %s1700_s15 = smov 32   ;;  %v1701_v3 = vmov 0   ;;  %vm35_vm0 = vcmask 523264   ;;  %v1702_v9 = vmov 0.0   ;;  %s2191_s0 = inlined_call_operand.vmem [shape: f32[2,8,16], index: 0, kind: input, shape index: {}]   ;;  %s2192_s1 = inlined_call_operand.vmem [shape: bf16[64,256], index: 1, kind: input, shape index: {}]   ;;  %s2193_s2 = inlined_call_operand.vmem [shape: bf16[16,256], index: 2, kind: input, shape index: {}]   ;;  %s2194_s3 = inlined_call_operand.vmem [shape: f32[1,256], index: 3, kind: input, shape index: {}]   ;;  %s2195_s4 = inlined_call_operand.vmem [shape: bf16[32,16], index: 4, kind: input, shape index: {}]   ;;  %s2196_s5 = inlined_call_operand.vmem [shape: f32[1,16], index: 5, kind: input, shape index: {}]   ;;  %s2197_s6 = inlined_call_operand.vmem [shape: f32[2,2,32], index: 6, kind: input, shape index: {}]   ;;  %s2198_s7 = inlined_call_operand.vmem [shape: f32[2,2,32], index: 7, kind: input, shape index: {}]   ;;  %s2199_s8 = inlined_call_operand.hbm [shape: f32[16,16], index: 8, kind: output, shape index: {0}]   ;;  %s2200_s9 = inlined_call_operand.hbm [shape: f32[2,2,32], index: 9, kind: output, shape index: {1}]   ;;  %s2201_s10 = inlined_call_operand.hbm [shape: f32[2,2,32], index: 10, kind: output, shape index: {2}]  }
   0x1   :  { %v1423_v0 = vld [vmem:[%s2197_s6 + $0x2] sm:$0x3]  ;;  %v1505_v1 = vld [vmem:[%s2193_s2 + $0x4] ss:$8 sps:$4 sm:$0xff]   ;;  %139 = vmatprep.mubr.bf16.mxu0 %v1701_v3  ;;  %273 = vmatprep.mubr.bf16.mxu1 %v1701_v3  ;;  %36 = vst.msk [vmem:[#allocation4] sm:$0xff] %vm35_vm0, %v1702_v9  ;;  %vm39_vm1 = vcmask 254976  }
   0x2   :  { %44 = vrot.lane.b32.xlu0 %v1423_v0, %s1700_s15  ;;  %v1507_v2 = vld [vmem:[%s2193_s2] ss:$8 sps:$4 sm:$0xff]   ;;  %107 = vmatprep.subr.bf16.mxu0 %v1505_v1  ;;  %v1789_v8 = vld [vmem:[%s2192_s1 + $0x4] ss:$8 sps:$4 sm:$0xff]   ;;  %37 = vst.msk [vmem:[#allocation4 + $0x8] sm:$0xff] %vm35_vm0, %v1702_v9  ;;  %61 = vst [vmem:[#allocation2] sm:$0xff] %v1702_v9 }
   0x3   :  { %v80_v4 = vld [vmem:[%s2191_s0] sm:$0xff]  ;;  %v1428_v5 = vld [vmem:[%s2191_s0 + $0x8] sm:$0xff]  ;;  %241 = vmatprep.subr.bf16.mxu1 %v1505_v1  ;;  %62 = vst [vmem:[#allocation2 + $0x8] sm:$0xff] %v1702_v9  ;;  %63 = vst [vmem:[#allocation2 + $0x10] sm:$0xff] %v1702_v9  ;;  %108 = vmatpush1.bf16.msra.mxu0 %v1507_v2  ;;  %vm103_vm2 = vcmask 130048  }
   0x4   :  { %v81_v6 = vpack.c.bf16 %v80_v4, %v80_v4  ;;  %v237_v7 = vpack.c.bf16 %v1428_v5, %v1428_v5  ;;  %64 = vst [vmem:[#allocation2 + $0x18] sm:$0xff] %v1702_v9  ;;  %65 = vst [vmem:[#allocation2 + $0x20] sm:$0xff] %v1702_v9  ;;  %242 = vmatpush1.bf16.msra.mxu1 %v1507_v2  ;;  %v1814_v10 = vld [vmem:[%s2192_s1] ss:$8 sps:$4 sm:$0xff]   ;;  %v1819_v11 = vld [vmem:[%s2192_s1 + $0x14] ss:$8 sps:$4 sm:$0xff]   ;;  %430 = vmatprep.subr.bf16.mxu0 %v1789_v8 }
   0x5   :  { %66 = vst [vmem:[#allocation2 + $0x28] sm:$0xff] %v1702_v9  ;;  %67 = vst [vmem:[#allocation2 + $0x30] sm:$0xff] %v1702_v9  ;;  %v38_v12 = vld [vmem:[%s2197_s6] sm:$0x3]  ;;  %516 = vmatprep.subr.bf16.mxu1 %v1789_v8  ;;  %v1833_v13 = vld [vmem:[%s2192_s1 + $0x10] ss:$8 sps:$4 sm:$0xff]  }
   0x6   :  { %68 = vst [vmem:[#allocation2 + $0x38] sm:$0xff] %v1702_v9  ;;  %69 = vst [vmem:[#allocation2 + $0x40] sm:$0xff] %v1702_v9  ;;  %1427 = vmatmul.mubr.msk.bf16.vlgmr.msra.gmra.mrb[0].mxu0 %vm103_vm2, %v81_v6  ;;  %v1424_v14 = vld [vmem:[%s2198_s7 + $0x2] sm:$0x3]  ;;  %v49_v15 = vld [vmem:[%s2198_s7] sm:$0x3] }
   0x7   :  { %70 = vst [vmem:[#allocation2 + $0x48] sm:$0xff] %v1702_v9  ;;  %71 = vst [vmem:[#allocation2 + $0x50] sm:$0xff] %v1702_v9  ;;  %1429 = vmatmul.mubr.msk.bf16.vlgmr.msra.gmra.mrb[0].mxu1 %vm103_vm2, %v237_v7  ;;  %431 = vmatpush1.bf16.msra.mxu0 %v1814_v10  ;;  %v1846_v16 = vld [vmem:[%s2192_s1 + $0x24] ss:$8 sps:$4 sm:$0xff]  }
   0x8   :  { %72 = vst [vmem:[#allocation2 + $0x58] sm:$0xff] %v1702_v9  ;;  %73 = vst [vmem:[#allocation2 + $0x60] sm:$0xff] %v1702_v9  ;;  %462 = vmatprep.mubr.bf16.mxu0 %v1701_v3  ;;  %432 = vmatprep.subr.bf16.mxu0 %v1819_v11 }
   0x9   :  { %74 = vst [vmem:[#allocation2 + $0x68] sm:$0xff] %v1702_v9  ;;  %75 = vst [vmem:[#allocation2 + $0x70] sm:$0xff] %v1702_v9  ;;  %55 = vrot.lane.b32.xlu0 %v1424_v14, %s1700_s15  ;;  %517 = vmatpush1.bf16.msra.mxu1 %v1814_v10 }
   0xa   :  { %76 = vst [vmem:[#allocation2 + $0x78] sm:$0xff] %v1702_v9  ;;  %40 = vst.msk [vmem:[#allocation4] sm:$0x3] %vm39_vm1, %v38_v12  ;;  %548 = vmatprep.mubr.bf16.mxu1 %v1701_v3 }
   0xb   :  { %51 = vst.msk [vmem:[#allocation4 + $0x8] sm:$0x3] %vm39_vm1, %v49_v15 }
   0xc   :  { %17 = vsyncpa [#allocation8], 0  ;;  %518 = vmatprep.subr.bf16.mxu1 %v1819_v11  ;;  %433 = vmatpush1.bf16.msra.mxu0 %v1833_v13  ;;  %v1857_v17 = vld [vmem:[%s2192_s1 + $0x20] ss:$8 sps:$4 sm:$0xff]   ;;  %v1863_v18 = vld [vmem:[%s2192_s1 + $0x34] ss:$8 sps:$4 sm:$0xff]   ;;  %v83_v25 = vlaneseq }
   0xd   :  { %434 = vmatprep.subr.bf16.mxu0 %v1846_v16  ;;  %519 = vmatpush1.bf16.msra.mxu1 %v1833_v13  ;;  %v1871_v19 = vld [vmem:[%s2192_s1 + $0x30] ss:$8 sps:$4 sm:$0xff]   ;;  %vm47_vm3 = vcmask 517376   ;;  %s1703_s1 = smov 64   ;;  %v79_v28 = vld [vmem:[%s2194_s3] sm:$0x3] }
   0xe   :  { %520 = vmatprep.subr.bf16.mxu1 %v1846_v16  ;;  %v84_v26 = vshrl.u32 %v83_v25, 7  ;;  %v1704_v29 = vmov 1966171168   ;;  %vm1903_vm4 = vcmp.lt.s32.totalorder %v83_v25, 256  ;;  %vm590_vm7 = vcmask 261120   ;;  %s1707_s26 = smov [#allocation7]  }
   0xf   :  { %v152_v30 = vunpack.c.l.s4 %v1704_v29  ;;  %vm1705_vm8 = vmmov 0   ;;  %vm1233_vm9 = vcmask 1041409   ;;  %vm1236_vm10 = vcmask 1042434   ;;  %s1386_s27 = sshll.u32 %s1707_s26, 4  ;;  %s1708_s28 = smov [#allocation9]   ;;  %s1387_s27 = int_to_ptr.vmem [resolvable:$true] %s1386_s27 }
  0x10   :  { %435 = vmatpush1.bf16.msra.mxu0 %v1857_v17  ;;  %v85_v27 = vsub.s32 0, %v84_v26  ;;  %v89_v31 = vsub.s32 1, %v84_v26  ;;  %vm1239_vm11 = vcmask 1043459   ;;  %vm1242_vm12 = vcmask 1044484   ;;  %s1398_s29 = sshll.u32 %s1708_s28, 4  ;;  %s1630_s30 = scalar_lea.vmem %s1387_s27, 64  ;;  %s1399_s29 = int_to_ptr.vmem [resolvable:$true] %s1398_s29 }
  0x11   :  { %436 = vmatprep.subr.bf16.mxu0 %v1863_v18  ;;  %521 = vmatpush1.bf16.msra.mxu1 %v1857_v17  ;;  %v153_v33 = vunpack.c.0.s8 %v152_v30  ;;  %vm1245_vm13 = vcmask 1045509   ;;  %vm1248_vm14 = vcmask 1046534   ;;  %vm1251_vm15 = vcmask 1047559   ;;  %p1631_p0 = scmp.ne.s32.totalorder %s1387_s27, %s1630_s30  ;;  %p1635_p1 = scmp.lt.s32.totalorder %s1387_s27, %s1387_s27 }
  0x12   :  { %522 = vmatprep.subr.bf16.mxu1 %v1863_v18  ;;  %v86_v32 = vrot.slane %v79_v28, %v85_v27  ;;  %v90_v34 = vrot.slane %v79_v28, %v89_v31  ;;  %p1636_p2 = scmp.lt.s32.totalorder %s1630_s30, %s1630_s30 }
  0x13   :  { %v156_v41 = vsub.s32 %v153_v33, %v84_v26 }
  0x14   :  { %437 = vmatpush1.bf16.msra.mxu0 %v1871_v19  ;;  %p1637_p3 = por %p1636_p2, %p1635_p1 }
  0x15   :  { %601 = vmatprep.subr.bf16.mxu0 %v1789_v8  ;;  %523 = vmatpush1.bf16.msra.mxu1 %v1871_v19 }
  0x16   :  { %682 = vmatprep.subr.bf16.mxu1 %v1789_v8  ;;  %p1638_p4 = pnand %p1637_p3, %p1631_p0 }
  0x74   :  { %v45_v20 = vpop.permute.xlu0 %44 }
  0x75   :  { %48 = vst.msk [vmem:[#allocation4] sm:$0x3] %vm47_vm3, %v45_v20 }
  0x7b   :  { %v56_v22 = vpop.permute.xlu0 %55 }
  0x7c   :  { %v1880_v21 = vld [vmem:[#allocation4] sm:$0xff]  ;;  %58 = vst.msk [vmem:[#allocation4 + $0x8] sm:$0x3] %vm47_vm3, %v56_v22 }
  0x7d   :  { %v386_v23 = vpack.c.bf16 %v1880_v21, %v1880_v21 }
  0x7f   :  { %1438 = vmatmul.mubr.msk.bf16.vlgmr.msra.gmra.mrb[4].mxu0 %vm35_vm0, %v386_v23 }
  0x80   :  { %602 = vmatpush1.bf16.msra.mxu0 %v1814_v10  ;;  %633 = vmatprep.mubr.bf16.mxu0 %v1701_v3 }
  0x81   :  { %603 = vmatprep.subr.bf16.mxu0 %v1819_v11 }
  0x83   :  { %v1888_v24 = vld [vmem:[#allocation4 + $0x8] sm:$0xff] }
  0x84   :  { %604 = vmatpush1.bf16.msra.mxu0 %v1833_v13  ;;  %488 = vrot.lane.b32.xlu1 %v1888_v24, %s1703_s1 }
  0x85   :  { %605 = vmatprep.subr.bf16.mxu0 %v1846_v16 }
  0x88   :  { %606 = vmatpush1.bf16.msra.mxu0 %v1857_v17 }
  0x89   :  { %607 = vmatprep.subr.bf16.mxu0 %v1863_v18 }
  0x8c   :  { %608 = vmatpush1.bf16.msra.mxu0 %v1871_v19 }
  0x8d   :  { %763 = vmatprep.subr.bf16.mxu0 %v1789_v8 }
  0xd9   :  { %v141_v35 = vpop.f32.mrb[0].mxu0 }
  0xda   :  { %v275_v36 = vpop.f32.mrb[0].mxu1  ;;  %v142_v37 = vadd.f32 %v141_v35, %v86_v32  ;;  %v143_v39 = vpop.f32.mrb[1].mxu0 }
  0xdb   :  { %v276_v38 = vadd.f32 %v275_v36, %v86_v32  ;;  %v277_v40 = vpop.f32.mrb[1].mxu1  ;;  %v144_v42 = vadd.f32 %v143_v39, %v90_v34  ;;  %v145_v44 = vpop.f32.mrb[2].mxu0 }
  0xdc   :  { %v278_v43 = vadd.f32 %v277_v40, %v90_v34  ;;  %v279_v45 = vpop.f32.mrb[2].mxu1  ;;  %v146_v46 = vpop.f32.mrb[3].mxu0  ;;  %v1940_v40 = vand.u32 127, %v83_v25 }
  0xdd   :  { %v280_v47 = vpop.f32.mrb[3].mxu1  ;;  %v150_v48 = vcombine.low %v142_v37, %v144_v42  ;;  %v194_v49 = vcombine.high %v142_v37, %v144_v42 }
  0xde   :  { %v284_v50 = vcombine.low %v276_v38, %v278_v43  ;;  %v325_v51 = vcombine.high %v276_v38, %v278_v43  ;;  %vm383_vm6 = vcmp.lt.s32.totalorder %v1940_v40, 32 }
  0xdf   :  { %v157_v52 = vrot.slane %v150_v48, %v156_v41  ;;  %v201_v53 = vrot.slane %v194_v49, %v156_v41 }
  0xe0   :  { %v291_v54 = vrot.slane %v284_v50, %v156_v41  ;;  %v332_v55 = vrot.slane %v325_v51, %v156_v41 }
  0xe1   :  { %v164_v57 = vrot.slane %v157_v52, %v156_v41  ;;  %v172_v58 = vcombine.high %v157_v52, %v157_v52  ;;  %v208_v59 = vrot.slane %v201_v53, %v156_v41  ;;  %v213_v60 = vcombine.high %v201_v53, %v201_v53 }
  0xe2   :  { %v298_v61 = vrot.slane %v291_v54, %v156_v41  ;;  %v303_v62 = vcombine.high %v291_v54, %v291_v54  ;;  %v339_v63 = vrot.slane %v332_v55, %v156_v41  ;;  %v344_v0 = vcombine.high %v332_v55, %v332_v55 }
  0xe3   :  { %170 = vst.msk [vmem:[#allocation2] ss:$8 sm:$0x3] %vm1903_vm4, %v164_v57  ;;  %v179_v1 = vrot.slane %v172_v58, %v156_v41  ;;  %v184_v2 = vcombine.high %v164_v57, %v164_v57  ;;  %211 = vst.msk [vmem:[#allocation2 + $0x40] ss:$8 sm:$0x3] %vm1903_vm4, %v208_v59  ;;  %v220_v4 = vrot.slane %v213_v60, %v156_v41 }
  0xe4   :  { %v225_v5 = vcombine.high %v208_v59, %v208_v59  ;;  %301 = vst.msk [vmem:[#allocation2 + $0x1] ss:$8 sm:$0x3] %vm1903_vm4, %v298_v61  ;;  %v310_v6 = vrot.slane %v303_v62, %v156_v41  ;;  %v315_v7 = vcombine.high %v298_v61, %v298_v61  ;;  %342 = vst.msk [vmem:[#allocation2 + $0x41] ss:$8 sm:$0x3] %vm1903_vm4, %v339_v63 }
  0xe5   :  { %v351_v12 = vrot.slane %v344_v0, %v156_v41  ;;  %v356_v14 = vcombine.high %v339_v63, %v339_v63  ;;  %182 = vst.msk [vmem:[#allocation2 + $0x10] ss:$8 sm:$0x3] %vm1903_vm4, %v179_v1  ;;  %187 = vst.msk [vmem:[#allocation2 + $0x20] ss:$8 sm:$0x3] %vm1903_vm4, %v184_v2  ;;  %v189_v15 = vcombine.high %v179_v1, %v179_v1 }
  0xe6   :  { %223 = vst.msk [vmem:[#allocation2 + $0x50] ss:$8 sm:$0x3] %vm1903_vm4, %v220_v4  ;;  %228 = vst.msk [vmem:[#allocation2 + $0x60] ss:$8 sm:$0x3] %vm1903_vm4, %v225_v5  ;;  %v230_v20 = vcombine.high %v220_v4, %v220_v4  ;;  %v320_v22 = vcombine.high %v310_v6, %v310_v6 }
  0xe7   :  { %313 = vst.msk [vmem:[#allocation2 + $0x11] ss:$8 sm:$0x3] %vm1903_vm4, %v310_v6  ;;  %318 = vst.msk [vmem:[#allocation2 + $0x21] ss:$8 sm:$0x3] %vm1903_vm4, %v315_v7  ;;  %v361_v23 = vcombine.high %v351_v12, %v351_v12 }
  0xe8   :  { %354 = vst.msk [vmem:[#allocation2 + $0x51] ss:$8 sm:$0x3] %vm1903_vm4, %v351_v12  ;;  %359 = vst.msk [vmem:[#allocation2 + $0x61] ss:$8 sm:$0x3] %vm1903_vm4, %v356_v14 }
  0xe9   :  { %192 = vst.msk [vmem:[#allocation2 + $0x30] ss:$8 sm:$0x3] %vm1903_vm4, %v189_v15  ;;  %233 = vst.msk [vmem:[#allocation2 + $0x70] ss:$8 sm:$0x3] %vm1903_vm4, %v230_v20 }
  0xea   :  { %323 = vst.msk [vmem:[#allocation2 + $0x31] ss:$8 sm:$0x3] %vm1903_vm4, %v320_v22  ;;  %364 = vst.msk [vmem:[#allocation2 + $0x71] ss:$8 sm:$0x3] %vm1903_vm4, %v361_v23 }
  0xeb   :  { %v384_v26 = vld [vmem:[#allocation2] sm:$0xff]  ;;  %v385_v27 = vld [vmem:[#allocation2 + $0x8] sm:$0xff]  ;;  %v1943_v41 = vadd.s32 128, %v1940_v40 }
  0xed   :  { %vm380_vm5 = vcmp.lt.s32.totalorder %v1943_v41, 192 }
  0xee   :  { %v511_v58 = vld [vmem:[#allocation2 + $0x18] sm:$0xff] }
  0xf6   :  { %v489_v47 = vpop.permute.xlu1 %488 }
 0x152   :  { %v464_v28 = vpop.f32.mrb[4].mxu0 }
 0x153   :  { %v465_v29 = vadd.f32 %v464_v28, %v384_v26  ;;  %v466_v30 = vpop.f32.mrb[5].mxu0 }
 0x154   :  { %v467_v31 = vadd.f32 %v466_v30, %v385_v27  ;;  %v468_v32 = vpop.f32.mrb[6].mxu0 }
 0x155   :  { %v1439_v33 = vmul.f32 -1.442695, %v465_v29  ;;  %v469_v34 = vpop.f32.mrb[7].mxu0 }
 0x156   :  { %v1440_v35 = vmul.f32 -1.442695, %v467_v31  ;;  %v593_v34 = vld [vmem:[#allocation2 + $0x28] sm:$0xff] }
 0x157   :  { %1522 = vpow2.f32 %v1439_v33 }
 0x158   :  { %1524 = vpow2.f32 %v1440_v35 }
 0x159   :  { %1526 = vtanh.f32 %v467_v31  ;;  %v592_v31 = vld [vmem:[#allocation2 + $0x20] sm:$0xff] }
 0x161   :  { %v1523_v36 = vpop.eup %1522 }
 0x162   :  { %v1525_v37 = vpop.eup %1524  ;;  %v479_v38 = vadd.f32 1.0, %v1523_v36 }
 0x163   :  { %v480_v39 = vadd.f32 1.0, %v1525_v37  ;;  %v1527_v42 = vpop.eup %1526 }
 0x165   :  { %1528 = vrcp.f32 %v480_v39 }
 0x166   :  { %1530 = vrcp.f32 %v479_v38 }
 0x16f   :  { %v1529_v43 = vpop.eup %1528 }
 0x170   :  { %v1531_v44 = vpop.eup %1530  ;;  %v486_v45 = vsel %vm380_vm5, %v1527_v42, %v1529_v43 }
 0x171   :  { %v492_v46 = vmul.f32 %v1531_v44, %v486_v45  ;;  %v491_v48 = vmul.f32 %v1531_v44, %v489_v47 }
 0x173   :  { %494 = vrot.lane.b32.xlu1 %v492_v46, %s1703_s1 }
 0x1e5   :  { %v495_v25 = vpop.permute.xlu1 %494 }
 0x1e6   :  { %v497_v49 = vadd.f32 %v495_v25, %v491_v48 }
 0x1e8   :  { %1532 = vtanh.f32 %v497_v49  ;;  %506 = vrot.lane.b32.xlu1 %v497_v49, %s1703_s1 }
 0x1f2   :  { %v1533_v50 = vpop.eup %1532 }
 0x1f3   :  { %v499_v51 = vmul.f32 %v1533_v50, %v486_v45 }
 0x1f5   :  { %501 = vrot.lane.b32.xlu0 %v499_v51, %s1703_s1 }
 0x25a   :  { %v507_v52 = vpop.permute.xlu1 %506 }
 0x25b   :  { %v509_v53 = vsel %vm383_vm6, %v507_v52, %v1888_v24 }
 0x25c   :  { %574 = vrot.lane.b32.xlu0 %v509_v53, %s1703_s1 }
 0x267   :  { %v502_v54 = vpop.permute.xlu0 %501 }
 0x268   :  { %v504_v55 = vsel %vm383_vm6, %v502_v54, %v1880_v21  ;;  %v510_v21 = vld [vmem:[#allocation2 + $0x10] sm:$0xff] }
 0x269   :  { %v512_v56 = vpack.c.bf16 %v504_v55, %v504_v55 }
 0x26b   :  { %1441 = vmatmul.mubr.msk.bf16.vlgmr.msra.gmra.mrb[4].mxu1 %vm35_vm0, %v512_v56 }
 0x26c   :  { %683 = vmatpush1.bf16.msra.mxu1 %v1814_v10  ;;  %714 = vmatprep.mubr.bf16.mxu1 %v1701_v3 }
 0x26d   :  { %684 = vmatprep.subr.bf16.mxu1 %v1819_v11 }
 0x270   :  { %685 = vmatpush1.bf16.msra.mxu1 %v1833_v13 }
 0x271   :  { %686 = vmatprep.subr.bf16.mxu1 %v1846_v16 }
 0x274   :  { %687 = vmatpush1.bf16.msra.mxu1 %v1857_v17 }
 0x275   :  { %688 = vmatprep.subr.bf16.mxu1 %v1863_v18 }
 0x278   :  { %689 = vmatpush1.bf16.msra.mxu1 %v1871_v19 }
 0x279   :  { %844 = vmatprep.subr.bf16.mxu1 %v1789_v8 }
 0x2ce   :  { %v575_v20 = vpop.permute.xlu0 %574 }
 0x33e   :  { %v550_v24 = vpop.f32.mrb[4].mxu1 }
 0x33f   :  { %v551_v57 = vadd.f32 %v550_v24, %v510_v21  ;;  %v552_v59 = vpop.f32.mrb[5].mxu1  ;;  %v673_v24 = vld [vmem:[#allocation2 + $0x30] sm:$0xff] }
 0x340   :  { %v553_v60 = vadd.f32 %v552_v59, %v511_v58  ;;  %v554_v61 = vpop.f32.mrb[6].mxu1  ;;  %v674_v59 = vld [vmem:[#allocation2 + $0x38] sm:$0xff] }
 0x341   :  { %v1442_v62 = vmul.f32 -1.442695, %v551_v57  ;;  %v555_v63 = vpop.f32.mrb[7].mxu1 }
 0x342   :  { %v1443_v0 = vmul.f32 -1.442695, %v553_v60 }
 0x343   :  { %1534 = vpow2.f32 %v1442_v62 }
 0x344   :  { %1536 = vpow2.f32 %v1443_v0 }
 0x345   :  { %1538 = vtanh.f32 %v553_v60 }
 0x34d   :  { %v1535_v1 = vpop.eup %1534 }
 0x34e   :  { %v1537_v2 = vpop.eup %1536  ;;  %v565_v4 = vadd.f32 1.0, %v1535_v1 }
 0x34f   :  { %v566_v5 = vadd.f32 1.0, %v1537_v2  ;;  %v1539_v6 = vpop.eup %1538 }
 0x351   :  { %1540 = vrcp.f32 %v566_v5 }
 0x352   :  { %1542 = vrcp.f32 %v565_v4 }
 0x35b   :  { %v1541_v7 = vpop.eup %1540 }
 0x35c   :  { %v1543_v12 = vpop.eup %1542  ;;  %v572_v14 = vsel %vm380_vm5, %v1539_v6, %v1541_v7 }
 0x35d   :  { %v578_v15 = vmul.f32 %v1543_v12, %v572_v14  ;;  %v577_v22 = vmul.f32 %v1543_v12, %v575_v20 }
 0x35f   :  { %580 = vrot.lane.b32.xlu1 %v578_v15, %s1703_s1 }
 0x3d1   :  { %v581_v23 = vpop.permute.xlu1 %580 }
 0x3d2   :  { %v583_v26 = vadd.f32 %v581_v23, %v577_v22 }
 0x3d4   :  { %1544 = vtanh.f32 %v583_v26 }
 0x3de   :  { %v1545_v27 = vpop.eup %1544 }
 0x3df   :  { %v1972_v28 = vmul.f32 %v1545_v27, %v572_v14 }
 0x3e1   :  { %v594_v29 = vpack.c.bf16 %v1972_v28, %v1972_v28 }
 0x3e3   :  { %596 = vrot.lane.b32.xlu0 %v594_v29, %s1703_s1 }
 0x455   :  { %v597_v30 = vpop.permute.xlu0 %596 }
 0x456   :  { %1444 = vmatmul.mubr.msk.bf16.vlgmr.msra.gmra.mrb[8].mxu0 %vm35_vm0, %v597_v30 }
 0x457   :  { %764 = vmatpush1.bf16.msra.mxu0 %v1814_v10  ;;  %795 = vmatprep.mubr.bf16.mxu0 %v1701_v3 }
 0x458   :  { %765 = vmatprep.subr.bf16.mxu0 %v1819_v11 }
 0x45b   :  { %766 = vmatpush1.bf16.msra.mxu0 %v1833_v13 }
 0x45c   :  { %767 = vmatprep.subr.bf16.mxu0 %v1846_v16 }
 0x45f   :  { %768 = vmatpush1.bf16.msra.mxu0 %v1857_v17 }
 0x460   :  { %769 = vmatprep.subr.bf16.mxu0 %v1863_v18 }
 0x463   :  { %770 = vmatpush1.bf16.msra.mxu0 %v1871_v19 }
 0x464   :  { %925 = vmatprep.subr.bf16.mxu0 %v1789_v8 }
 0x529   :  { %v635_v32 = vpop.f32.mrb[8].mxu0 }
 0x52a   :  { %v636_v33 = vadd.f32 %v635_v32, %v592_v31  ;;  %v637_v35 = vpop.f32.mrb[9].mxu0  ;;  %v754_v32 = vld [vmem:[#allocation2 + $0x40] sm:$0xff] }
 0x52b   :  { %v638_v36 = vadd.f32 %v637_v35, %v593_v34  ;;  %v639_v37 = vpop.f32.mrb[10].mxu0  ;;  %v755_v35 = vld [vmem:[#allocation2 + $0x48] sm:$0xff] }
 0x52c   :  { %v1445_v38 = vmul.f32 -1.442695, %v636_v33  ;;  %v640_v39 = vpop.f32.mrb[11].mxu0 }
 0x52d   :  { %v1446_v42 = vmul.f32 -1.442695, %v638_v36 }
 0x52e   :  { %1546 = vpow2.f32 %v1445_v38 }
 0x52f   :  { %1548 = vpow2.f32 %v1446_v42 }
 0x530   :  { %1550 = vtanh.f32 %v638_v36 }
 0x538   :  { %v1547_v43 = vpop.eup %1546 }
 0x539   :  { %v1549_v44 = vpop.eup %1548  ;;  %v650_v45 = vadd.f32 1.0, %v1547_v43 }
 0x53a   :  { %v651_v46 = vadd.f32 1.0, %v1549_v44  ;;  %v1551_v47 = vpop.eup %1550 }
 0x53c   :  { %1552 = vrcp.f32 %v651_v46 }
 0x53d   :  { %1554 = vrcp.f32 %v650_v45 }
 0x546   :  { %v1553_v48 = vpop.eup %1552 }
 0x547   :  { %v1555_v25 = vpop.eup %1554  ;;  %v657_v49 = vsel %vm380_vm5, %v1551_v47, %v1553_v48 }
 0x548   :  { %v659_v50 = vmul.f32 %v1555_v25, %v657_v49  ;;  %v658_v51 = vmul.f32 %v1555_v25, %v583_v26 }
 0x54a   :  { %661 = vrot.lane.b32.xlu1 %v659_v50, %s1703_s1 }
 0x5bc   :  { %v662_v52 = vpop.permute.xlu1 %661 }
 0x5bd   :  { %v664_v53 = vadd.f32 %v662_v52, %v658_v51 }
 0x5bf   :  { %1556 = vtanh.f32 %v664_v53 }
 0x5c9   :  { %v1557_v54 = vpop.eup %1556 }
 0x5ca   :  { %v1990_v55 = vmul.f32 %v1557_v54, %v657_v49 }
 0x5cc   :  { %v675_v56 = vpack.c.bf16 %v1990_v55, %v1990_v55 }
 0x5ce   :  { %677 = vrot.lane.b32.xlu0 %v675_v56, %s1703_s1 }
 0x640   :  { %v678_v21 = vpop.permute.xlu0 %677 }
 0x641   :  { %1447 = vmatmul.mubr.msk.bf16.vlgmr.msra.gmra.mrb[8].mxu1 %vm35_vm0, %v678_v21 }
 0x642   :  { %845 = vmatpush1.bf16.msra.mxu1 %v1814_v10  ;;  %876 = vmatprep.mubr.bf16.mxu1 %v1701_v3 }
 0x643   :  { %846 = vmatprep.subr.bf16.mxu1 %v1819_v11 }
 0x646   :  { %847 = vmatpush1.bf16.msra.mxu1 %v1833_v13 }
 0x647   :  { %848 = vmatprep.subr.bf16.mxu1 %v1846_v16 }
 0x64a   :  { %849 = vmatpush1.bf16.msra.mxu1 %v1857_v17 }
 0x64b   :  { %850 = vmatprep.subr.bf16.mxu1 %v1863_v18 }
 0x64e   :  { %851 = vmatpush1.bf16.msra.mxu1 %v1871_v19 }
 0x64f   :  { %1006 = vmatprep.subr.bf16.mxu1 %v1789_v8 }
 0x714   :  { %v716_v57 = vpop.f32.mrb[8].mxu1 }
 0x715   :  { %v717_v58 = vadd.f32 %v716_v57, %v673_v24  ;;  %v718_v60 = vpop.f32.mrb[9].mxu1  ;;  %v835_v57 = vld [vmem:[#allocation2 + $0x50] sm:$0xff] }
 0x716   :  { %v719_v61 = vadd.f32 %v718_v60, %v674_v59  ;;  %v720_v62 = vpop.f32.mrb[10].mxu1  ;;  %v836_v60 = vld [vmem:[#allocation2 + $0x58] sm:$0xff] }
 0x717   :  { %v1448_v63 = vmul.f32 -1.442695, %v717_v58  ;;  %v721_v0 = vpop.f32.mrb[11].mxu1 }
 0x718   :  { %v1449_v1 = vmul.f32 -1.442695, %v719_v61 }
 0x719   :  { %1558 = vpow2.f32 %v1448_v63 }
 0x71a   :  { %1560 = vpow2.f32 %v1449_v1 }
 0x71b   :  { %1562 = vtanh.f32 %v719_v61 }
 0x723   :  { %v1559_v2 = vpop.eup %1558 }
 0x724   :  { %v1561_v4 = vpop.eup %1560  ;;  %v731_v5 = vadd.f32 1.0, %v1559_v2 }
 0x725   :  { %v732_v6 = vadd.f32 1.0, %v1561_v4  ;;  %v1563_v7 = vpop.eup %1562 }
 0x727   :  { %1564 = vrcp.f32 %v732_v6 }
 0x728   :  { %1566 = vrcp.f32 %v731_v5 }
 0x731   :  { %v1565_v12 = vpop.eup %1564 }
 0x732   :  { %v1567_v14 = vpop.eup %1566  ;;  %v738_v15 = vsel %vm380_vm5, %v1563_v7, %v1565_v12 }
 0x733   :  { %v740_v20 = vmul.f32 %v1567_v14, %v738_v15  ;;  %v739_v22 = vmul.f32 %v1567_v14, %v664_v53 }
 0x735   :  { %742 = vrot.lane.b32.xlu1 %v740_v20, %s1703_s1 }
 0x7a7   :  { %v743_v23 = vpop.permute.xlu1 %742 }
 0x7a8   :  { %v745_v26 = vadd.f32 %v743_v23, %v739_v22 }
 0x7aa   :  { %1568 = vtanh.f32 %v745_v26 }
 0x7b4   :  { %v1569_v27 = vpop.eup %1568 }
 0x7b5   :  { %v2008_v29 = vmul.f32 %v1569_v27, %v738_v15 }
 0x7b7   :  { %v756_v30 = vpack.c.bf16 %v2008_v29, %v2008_v29 }
 0x7b9   :  { %758 = vrot.lane.b32.xlu0 %v756_v30, %s1703_s1 }
 0x82b   :  { %v759_v31 = vpop.permute.xlu0 %758 }
 0x82c   :  { %1450 = vmatmul.mubr.msk.bf16.vlgmr.msra.gmra.mrb[12].mxu0 %vm35_vm0, %v759_v31 }
 0x82d   :  { %926 = vmatpush1.bf16.msra.mxu0 %v1814_v10  ;;  %957 = vmatprep.mubr.bf16.mxu0 %v1701_v3 }
 0x82e   :  { %927 = vmatprep.subr.bf16.mxu0 %v1819_v11 }
 0x831   :  { %928 = vmatpush1.bf16.msra.mxu0 %v1833_v13 }
 0x832   :  { %929 = vmatprep.subr.bf16.mxu0 %v1846_v16 }
 0x835   :  { %930 = vmatpush1.bf16.msra.mxu0 %v1857_v17 }
 0x836   :  { %931 = vmatprep.subr.bf16.mxu0 %v1863_v18 }
 0x839   :  { %932 = vmatpush1.bf16.msra.mxu0 %v1871_v19 }
 0x83a   :  { %1087 = vmatprep.subr.bf16.mxu0 %v1789_v8 }
 0x8ff   :  { %v797_v33 = vpop.f32.mrb[12].mxu0 }
 0x900   :  { %v798_v34 = vadd.f32 %v797_v33, %v754_v32  ;;  %v799_v36 = vpop.f32.mrb[13].mxu0 }
 0x901   :  { %v800_v37 = vadd.f32 %v799_v36, %v755_v35  ;;  %v801_v38 = vpop.f32.mrb[14].mxu0 }
 0x902   :  { %v1451_v39 = vmul.f32 -1.442695, %v798_v34  ;;  %v802_v42 = vpop.f32.mrb[15].mxu0  ;;  %v916_v34 = vld [vmem:[#allocation2 + $0x60] sm:$0xff] }
 0x903   :  { %v1452_v43 = vmul.f32 -1.442695, %v800_v37 }
 0x904   :  { %1570 = vpow2.f32 %v1451_v39 }
 0x905   :  { %1572 = vpow2.f32 %v1452_v43 }
 0x906   :  { %1574 = vtanh.f32 %v800_v37  ;;  %v917_v37 = vld [vmem:[#allocation2 + $0x68] sm:$0xff] }
 0x90e   :  { %v1571_v44 = vpop.eup %1570 }
 0x90f   :  { %v1573_v45 = vpop.eup %1572  ;;  %v812_v46 = vadd.f32 1.0, %v1571_v44 }
 0x910   :  { %v813_v47 = vadd.f32 1.0, %v1573_v45  ;;  %v1575_v8 = vpop.eup %1574 }
 0x912   :  { %1576 = vrcp.f32 %v813_v47 }
 0x913   :  { %1578 = vrcp.f32 %v812_v46 }
 0x91c   :  { %v1577_v48 = vpop.eup %1576 }
 0x91d   :  { %v1579_v25 = vpop.eup %1578  ;;  %v819_v49 = vsel %vm380_vm5, %v1575_v8, %v1577_v48 }
 0x91e   :  { %v821_v50 = vmul.f32 %v1579_v25, %v819_v49  ;;  %v820_v51 = vmul.f32 %v1579_v25, %v745_v26 }
 0x920   :  { %823 = vrot.lane.b32.xlu1 %v821_v50, %s1703_s1 }
 0x992   :  { %v824_v52 = vpop.permute.xlu1 %823 }
 0x993   :  { %v826_v53 = vadd.f32 %v824_v52, %v820_v51  ;;  %v997_v52 = vld [vmem:[#allocation2 + $0x70] sm:$0xff] }
 0x995   :  { %1580 = vtanh.f32 %v826_v53 }
 0x99f   :  { %v1581_v54 = vpop.eup %1580 }
 0x9a0   :  { %v2026_v56 = vmul.f32 %v1581_v54, %v819_v49 }
 0x9a2   :  { %v837_v21 = vpack.c.bf16 %v2026_v56, %v2026_v56 }
 0x9a4   :  { %839 = vrot.lane.b32.xlu0 %v837_v21, %s1703_s1  ;;  %v998_v21 = vld [vmem:[#allocation2 + $0x78] sm:$0xff] }
 0xa16   :  { %v840_v24 = vpop.permute.xlu0 %839 }
 0xa17   :  { %1453 = vmatmul.mubr.msk.bf16.vlgmr.msra.gmra.mrb[12].mxu1 %vm35_vm0, %v840_v24 }
 0xa18   :  { %1007 = vmatpush1.bf16.msra.mxu1 %v1814_v10  ;;  %1038 = vmatprep.mubr.bf16.mxu1 %v1701_v3 }
 0xa19   :  { %1008 = vmatprep.subr.bf16.mxu1 %v1819_v11 }
 0xa1c   :  { %1009 = vmatpush1.bf16.msra.mxu1 %v1833_v13 }
 0xa1d   :  { %1010 = vmatprep.subr.bf16.mxu1 %v1846_v16 }
 0xa20   :  { %1011 = vmatpush1.bf16.msra.mxu1 %v1857_v17 }
 0xa21   :  { %1012 = vmatprep.subr.bf16.mxu1 %v1863_v18 }
 0xa24   :  { %1013 = vmatpush1.bf16.msra.mxu1 %v1871_v19 }
 0xa25   :  { %1476 = vmatprep.subr.bf16.mxu1 %v1702_v9 }
 0xaea   :  { %v878_v58 = vpop.f32.mrb[12].mxu1 }
 0xaeb   :  { %v879_v59 = vadd.f32 %v878_v58, %v835_v57  ;;  %v880_v61 = vpop.f32.mrb[13].mxu1 }
 0xaec   :  { %v881_v62 = vadd.f32 %v880_v61, %v836_v60  ;;  %v882_v63 = vpop.f32.mrb[14].mxu1 }
 0xaed   :  { %v1454_v0 = vmul.f32 -1.442695, %v879_v59  ;;  %v883_v1 = vpop.f32.mrb[15].mxu1 }
 0xaee   :  { %v1455_v2 = vmul.f32 -1.442695, %v881_v62 }
 0xaef   :  { %1582 = vpow2.f32 %v1454_v0 }
 0xaf0   :  { %1584 = vpow2.f32 %v1455_v2 }
 0xaf1   :  { %1586 = vtanh.f32 %v881_v62 }
 0xaf9   :  { %v1583_v4 = vpop.eup %1582 }
 0xafa   :  { %v1585_v5 = vpop.eup %1584  ;;  %v893_v6 = vadd.f32 1.0, %v1583_v4 }
 0xafb   :  { %v894_v7 = vadd.f32 1.0, %v1585_v5  ;;  %v1587_v12 = vpop.eup %1586 }
 0xafd   :  { %1588 = vrcp.f32 %v894_v7 }
 0xafe   :  { %1590 = vrcp.f32 %v893_v6 }
 0xb07   :  { %v1589_v14 = vpop.eup %1588 }
 0xb08   :  { %v1591_v15 = vpop.eup %1590  ;;  %v900_v20 = vsel %vm380_vm5, %v1587_v12, %v1589_v14 }
 0xb09   :  { %v902_v22 = vmul.f32 %v1591_v15, %v900_v20  ;;  %v901_v23 = vmul.f32 %v1591_v15, %v826_v53 }
 0xb0b   :  { %904 = vrot.lane.b32.xlu1 %v902_v22, %s1703_s1 }
 0xb7d   :  { %v905_v26 = vpop.permute.xlu1 %904 }
 0xb7e   :  { %v907_v27 = vadd.f32 %v905_v26, %v901_v23 }
 0xb80   :  { %1592 = vtanh.f32 %v907_v27 }
 0xb8a   :  { %v1593_v30 = vpop.eup %1592 }
 0xb8b   :  { %v2044_v31 = vmul.f32 %v1593_v30, %v900_v20 }
 0xb8d   :  { %v918_v32 = vpack.c.bf16 %v2044_v31, %v2044_v31 }
 0xb8f   :  { %920 = vrot.lane.b32.xlu0 %v918_v32, %s1703_s1 }
 0xc01   :  { %v921_v33 = vpop.permute.xlu0 %920 }
 0xc02   :  { %1456 = vmatmul.mubr.msk.bf16.vlgmr.msra.gmra.mrb[16].mxu0 %vm35_vm0, %v921_v33 }
 0xc03   :  { %1088 = vmatpush1.bf16.msra.mxu0 %v1814_v10  ;;  %1119 = vmatprep.mubr.bf16.mxu0 %v1701_v3 }
 0xc04   :  { %1089 = vmatprep.subr.bf16.mxu0 %v1819_v11 }
 0xc07   :  { %1090 = vmatpush1.bf16.msra.mxu0 %v1833_v13 }
 0xc08   :  { %1091 = vmatprep.subr.bf16.mxu0 %v1846_v16 }
 0xc0b   :  { %1092 = vmatpush1.bf16.msra.mxu0 %v1857_v17 }
 0xc0c   :  { %1093 = vmatprep.subr.bf16.mxu0 %v1863_v18 }
 0xc0f   :  { %1094 = vmatpush1.bf16.msra.mxu0 %v1871_v19 }
 0xcd5   :  { %v959_v35 = vpop.f32.mrb[16].mxu0 }
 0xcd6   :  { %v960_v36 = vadd.f32 %v959_v35, %v916_v34  ;;  %v961_v38 = vpop.f32.mrb[17].mxu0 }
 0xcd7   :  { %v962_v10 = vadd.f32 %v961_v38, %v917_v37  ;;  %v963_v39 = vpop.f32.mrb[18].mxu0 }
 0xcd8   :  { %v1457_v3 = vmul.f32 -1.442695, %v960_v36  ;;  %v964_v42 = vpop.f32.mrb[19].mxu0 }
 0xcd9   :  { %v1458_v11 = vmul.f32 -1.442695, %v962_v10 }
 0xcda   :  { %1594 = vpow2.f32 %v1457_v3 }
 0xcdb   :  { %1596 = vpow2.f32 %v1458_v11 }
 0xcdc   :  { %1598 = vtanh.f32 %v962_v10 }
 0xce4   :  { %v1595_v13 = vpop.eup %1594 }
 0xce5   :  { %v1597_v16 = vpop.eup %1596  ;;  %v974_v43 = vadd.f32 1.0, %v1595_v13 }
 0xce6   :  { %v975_v17 = vadd.f32 1.0, %v1597_v16  ;;  %v1599_v18 = vpop.eup %1598 }
 0xce8   :  { %1600 = vrcp.f32 %v975_v17 }
 0xce9   :  { %1602 = vrcp.f32 %v974_v43 }
 0xcf2   :  { %v1601_v19 = vpop.eup %1600 }
 0xcf3   :  { %v1603_v44 = vpop.eup %1602  ;;  %v981_v45 = vsel %vm380_vm5, %v1599_v18, %v1601_v19 }
 0xcf4   :  { %v983_v46 = vmul.f32 %v1603_v44, %v981_v45  ;;  %v982_v47 = vmul.f32 %v1603_v44, %v907_v27 }
 0xcf6   :  { %985 = vrot.lane.b32.xlu1 %v983_v46, %s1703_s1 }
 0xd68   :  { %v986_v8 = vpop.permute.xlu1 %985 }
 0xd69   :  { %v988_v48 = vadd.f32 %v986_v8, %v982_v47 }
 0xd6b   :  { %1604 = vtanh.f32 %v988_v48 }
 0xd75   :  { %v1605_v25 = vpop.eup %1604 }
 0xd76   :  { %v2061_v49 = vmul.f32 %v1605_v25, %v981_v45 }
 0xd78   :  { %v999_v50 = vpack.c.bf16 %v2061_v49, %v2061_v49 }
 0xd7a   :  { %1001 = vrot.lane.b32.xlu0 %v999_v50, %s1703_s1 }
 0xdec   :  { %v1002_v51 = vpop.permute.xlu0 %1001 }
 0xded   :  { %1459 = vmatmul.mubr.msk.bf16.vlgmr.msra.gmra.mrb[16].mxu1 %vm35_vm0, %v1002_v51 }
 0xdee   :  { %1480 = vmatprep.mubr.msk.bf16.mxu1 %vm1705_vm8, %v1702_v9 }
 0xec0   :  { %v1040_v53 = vpop.f32.mrb[16].mxu1 }
 0xec1   :  { %v1041_v54 = vadd.f32 %v1040_v53, %v997_v52  ;;  %v1042_v24 = vpop.f32.mrb[17].mxu1 }
 0xec2   :  { %v1043_v57 = vadd.f32 %v1042_v24, %v998_v21  ;;  %v1044_v58 = vpop.f32.mrb[18].mxu1 }
 0xec3   :  { %v1460_v59 = vmul.f32 -1.442695, %v1041_v54  ;;  %v1045_v60 = vpop.f32.mrb[19].mxu1 }
 0xec4   :  { %v1461_v61 = vmul.f32 -1.442695, %v1043_v57 }
 0xec5   :  { %1606 = vpow2.f32 %v1460_v59 }
 0xec6   :  { %1608 = vpow2.f32 %v1461_v61 }
 0xec7   :  { %1610 = vtanh.f32 %v1043_v57 }
 0xecf   :  { %v1607_v62 = vpop.eup %1606 }
 0xed0   :  { %v1609_v63 = vpop.eup %1608  ;;  %v1055_v0 = vadd.f32 1.0, %v1607_v62 }
 0xed1   :  { %v1056_v1 = vadd.f32 1.0, %v1609_v63  ;;  %v1611_v2 = vpop.eup %1610 }
 0xed3   :  { %1612 = vrcp.f32 %v1056_v1 }
 0xed4   :  { %1614 = vrcp.f32 %v1055_v0 }
 0xedd   :  { %v1613_v4 = vpop.eup %1612 }
 0xede   :  { %v1615_v5 = vpop.eup %1614  ;;  %v1062_v6 = vsel %vm380_vm5, %v1611_v2, %v1613_v4 }
 0xedf   :  { %v1064_v7 = vmul.f32 %v1615_v5, %v1062_v6  ;;  %v1063_v12 = vmul.f32 %v1615_v5, %v988_v48 }
 0xee1   :  { %1066 = vrot.lane.b32.xlu1 %v1064_v7, %s1703_s1 }
 0xf53   :  { %v1067_v14 = vpop.permute.xlu1 %1066 }
 0xf54   :  { %v1069_v15 = vadd.f32 %v1067_v14, %v1063_v12 }
 0xf56   :  { %1616 = vtanh.f32 %v1069_v15 }
 0xf60   :  { %v1617_v20 = vpop.eup %1616 }
 0xf61   :  { %v1071_v22 = vmul.f32 %v1617_v20, %v1062_v6 }
 0xf63   :  { %v1080_v23 = vpack.c.bf16 %v1071_v22, %v1071_v22 }
 0xf65   :  { %1082 = vrot.lane.b32.xlu0 %v1080_v23, %s1703_s1 }
 0xf69   :  { %668 = vrot.lane.b32.xlu0 %v1990_v55, %s1700_s15 }
 0xf6d   :  { %587 = vrot.lane.b32.xlu0 %v1972_v28, %s1700_s15 }
 0xf71   :  { %911 = vrot.lane.b32.xlu0 %v2044_v31, %s1700_s15 }
 0xf75   :  { %1073 = vrot.lane.b32.xlu0 %v1071_v22, %s1700_s15 }
 0xf79   :  { %1153 = vrot.lane.b32.xlu0 %v1071_v22, %s1703_s1 }
 0xf7d   :  { %1162 = vrot.lane.b32.xlu0 %v1069_v15, %s1703_s1 }
 0xfd7   :  { %v1083_v26 = vpop.permute.xlu0 %1082 }
 0xfd8   :  { %1462 = vmatmul.mubr.msk.bf16.vlgmr.msra.gmra.mrb[20].mxu0 %vm35_vm0, %v1083_v26 }
 0xfdb   :  { %v669_v27 = vpop.permute.xlu0 %668 }
 0xfdc   :  { %672 = vst.msk [vmem:[#allocation3 + $0x8] sm:$0xff] %vm590_vm7, %v669_v27 }
 0xfdf   :  { %v588_v55 = vpop.permute.xlu0 %587 }
 0xfe0   :  { %591 = vst.msk [vmem:[#allocation3] sm:$0xff] %vm590_vm7, %v588_v55 }
 0xfe3   :  { %v912_v28 = vpop.permute.xlu0 %911  ;;  %v1195_v25 = vld [vmem:[#allocation3 + $0x8] sm:$0xff] }
 0xfe4   :  { %915 = vst.msk [vmem:[#allocation3 + $0x20] sm:$0xff] %vm590_vm7, %v912_v28 }
 0xfe7   :  { %v1074_v30 = vpop.permute.xlu0 %1073  ;;  %v1194_v50 = vld [vmem:[#allocation3] sm:$0xff] }
 0xfe8   :  { %1077 = vst.msk [vmem:[#allocation3 + $0x30] sm:$0xff] %vm590_vm7, %v1074_v30  ;;  %v1202_v24 = vpack.c.bf16 %v1194_v50, %v1194_v50 }
 0xfea   :  { %v1224_v0 = vunpack.c.l.b16 %v1202_v24 }
 0xfeb   :  { %v1154_v1 = vpop.permute.xlu0 %1153 }
 0xfec   :  { %v1310_v27 = vrot.slane %v1224_v0, 1 }
 0xfef   :  { %v1200_v63 = vld [vmem:[#allocation3 + $0x30] sm:$0xff]  ;;  %v1163_v55 = vpop.permute.xlu0 %1162 }
 0xff0   :  { %v1208_v12 = vpack.c.bf16 %v1200_v63, %v1200_v63 }
0x10ab   :  { %v1121_v31 = vpop.f32.mrb[20].mxu0 }
0x10ac   :  { %v1122_v32 = vadd.f32 %v1121_v31, %v997_v52  ;;  %v1123_v33 = vpop.f32.mrb[21].mxu0  ;;  %v1203_v52 = vpack.c.bf16 %v1195_v25, %v1195_v25  ;;  %v1230_v31 = vunpack.c.l.b16 %v1208_v12 }
0x10ad   :  { %v1124_v34 = vadd.f32 %v1123_v33, %v998_v21  ;;  %v1125_v35 = vpop.f32.mrb[22].mxu0  ;;  %v1198_v21 = vld [vmem:[#allocation3 + $0x20] sm:$0xff] }
0x10ae   :  { %v1463_v36 = vmul.f32 -1.442695, %v1122_v32  ;;  %v1126_v37 = vpop.f32.mrb[23].mxu0  ;;  %v1225_v59 = vunpack.c.l.b16 %v1203_v52  ;;  %v1206_v62 = vpack.c.bf16 %v1198_v21, %v1198_v21 }
0x10af   :  { %v1464_v38 = vmul.f32 -1.442695, %v1124_v34 }
0x10b0   :  { %1618 = vpow2.f32 %v1463_v36  ;;  %v1232_v5 = vrot.slane %v1225_v59, 7  ;;  %v1228_v14 = vunpack.c.l.b16 %v1206_v62 }
0x10b1   :  { %1620 = vpow2.f32 %v1464_v38 }
0x10b2   :  { %1622 = vtanh.f32 %v1124_v34  ;;  %v1234_v20 = vsel %vm1233_vm9, %v1232_v5, %v1224_v0  ;;  %v1241_v32 = vrot.slane %v1228_v14, 4 }
0x10ba   :  { %v1619_v10 = vpop.eup %1618 }
0x10bb   :  { %v1621_v39 = vpop.eup %1620  ;;  %v1136_v3 = vadd.f32 1.0, %v1619_v10 }
0x10bc   :  { %v1137_v42 = vadd.f32 1.0, %v1621_v39  ;;  %v1623_v11 = vpop.eup %1622  ;;  %v1311_v39 = vsel %vm1233_vm9, %v1225_v59, %v1310_v27 }
0x10be   :  { %1624 = vrcp.f32 %v1137_v42 }
0x10bf   :  { %1626 = vrcp.f32 %v1136_v3  ;;  %v1247_v3 = vrot.slane %v1230_v31, 2 }
0x10c8   :  { %v1625_v13 = vpop.eup %1624 }
0x10c9   :  { %v1627_v16 = vpop.eup %1626  ;;  %v1143_v43 = vsel %vm380_vm5, %v1623_v11, %v1625_v13 }
0x10ca   :  { %v1145_v17 = vmul.f32 %v1627_v16, %v1143_v43  ;;  %v1144_v18 = vmul.f32 %v1627_v16, %v1069_v15 }
0x10cc   :  { %1147 = vrot.lane.b32.xlu1 %v1145_v17, %s1703_s1 }
0x10d0   :  { %749 = vrot.lane.b32.xlu1 %v2008_v29, %s1700_s15  ;;  %v2099_v29 = vld [vmem:[%s2195_s4] sm:$0xff]  }
0x10d1   :  { %1477 = vmatpush3.bf16.msra.mxu1 %v2099_v29 }
0x10d2   :  { %1478 = vmatprep.subr.bf16.mxu1 %v1702_v9 }
0x10d4   :  { %830 = vrot.lane.b32.xlu1 %v2026_v56, %s1700_s15  ;;  %v2105_v56 = vld [vmem:[%s2195_s4 + $0x8] sm:$0xff]   ;;  %s1706_s4 = smov 96  }
0x10d5   :  { %1479 = vmatpush3.bf16.msra.mxu1 %v2105_v56 }
0x10d6   :  { %1484 = vmatprep.subr.bf16.mxu1 %v1702_v9 }
0x10d8   :  { %992 = vrot.lane.b32.xlu1 %v2061_v49, %s1700_s15 }
0x113e   :  { %v1148_v19 = vpop.permute.xlu1 %1147 }
0x113f   :  { %v1150_v44 = vadd.f32 %v1148_v19, %v1144_v18 }
0x1141   :  { %1628 = vtanh.f32 %v1150_v44 }
0x1142   :  { %v750_v45 = vpop.permute.xlu1 %749 }
0x1143   :  { %753 = vst.msk [vmem:[#allocation3 + $0x10] sm:$0xff] %vm590_vm7, %v750_v45 }
0x1146   :  { %v831_v41 = vpop.permute.xlu1 %830 }
0x1147   :  { %834 = vst.msk [vmem:[#allocation3 + $0x18] sm:$0xff] %vm590_vm7, %v831_v41  ;;  %v1320_v41 = vrot.slane %v1230_v31, 3 }
0x114a   :  { %v993_v46 = vpop.permute.xlu1 %992  ;;  %v1196_v48 = vld [vmem:[#allocation3 + $0x10] sm:$0xff] }
0x114b   :  { %v1629_v47 = vpop.eup %1628  ;;  %996 = vst.msk [vmem:[#allocation3 + $0x28] sm:$0xff] %vm590_vm7, %v993_v46  ;;  %v1204_v51 = vpack.c.bf16 %v1196_v48, %v1196_v48 }
0x114c   :  { %v1152_v8 = vmul.f32 %v1629_v47, %v1143_v43  ;;  %v1316_v43 = vrot.slane %v1228_v14, 5 }
0x114d   :  { %v1226_v57 = vunpack.c.l.b16 %v1204_v51 }
0x114e   :  { %1170 = vrot.lane.b32.xlu1 %v1152_v8, %s1700_s15  ;;  %v1197_v49 = vld [vmem:[#allocation3 + $0x18] sm:$0xff] }
0x114f   :  { %v1205_v53 = vpack.c.bf16 %v1197_v49, %v1197_v49  ;;  %v1235_v2 = vrot.slane %v1226_v57, 6  ;;  %v1312_v33 = vrot.slane %v1226_v57, 7 }
0x1151   :  { %v1227_v60 = vunpack.c.l.b16 %v1205_v53  ;;  %v1237_v22 = vsel %vm1236_vm10, %v1235_v2, %v1234_v20  ;;  %v1313_v42 = vsel %vm1236_vm10, %v1312_v33, %v1311_v39 }
0x1152   :  { %1157 = vrot.lane.b32.xlu1 %v1152_v8, %s1703_s1  ;;  %v1199_v54 = vld [vmem:[#allocation3 + $0x28] sm:$0xff] }
0x1153   :  { %v1207_v58 = vpack.c.bf16 %v1199_v54, %v1199_v54  ;;  %v1238_v6 = vrot.slane %v1227_v60, 5  ;;  %v1314_v36 = vrot.slane %v1227_v60, 6 }
0x1155   :  { %v1229_v4 = vunpack.c.l.b16 %v1207_v58  ;;  %v1240_v23 = vsel %vm1239_vm11, %v1238_v6, %v1237_v22  ;;  %v1315_v40 = vsel %vm1239_vm11, %v1314_v36, %v1313_v42 }
0x1156   :  { %1166 = vrot.lane.b32.xlu1 %v1150_v44, %s1703_s1  ;;  %v1243_v37 = vsel %vm1242_vm12, %v1241_v32, %v1240_v23  ;;  %v1317_v19 = vsel %vm1242_vm12, %v1316_v43, %v1315_v40 }
0x1157   :  { %v1244_v26 = vrot.slane %v1229_v4, 3  ;;  %v1318_v13 = vrot.slane %v1229_v4, 4 }
0x1159   :  { %v1246_v10 = vsel %vm1245_vm13, %v1244_v26, %v1243_v37  ;;  %v1319_v44 = vsel %vm1245_vm13, %v1318_v13, %v1317_v19 }
0x115a   :  { %v1249_v16 = vsel %vm1248_vm14, %v1247_v3, %v1246_v10  ;;  %v1321_v46 = vsel %vm1248_vm14, %v1320_v41, %v1319_v44 }
0x11c0   :  { %v1171_v61 = vpop.permute.xlu1 %1170 }
0x11c1   :  { %1174 = vst.msk [vmem:[#allocation3 + $0x38] sm:$0xff] %vm590_vm7, %v1171_v61 }
0x11c4   :  { %v1158_v7 = vpop.permute.xlu1 %1157 }
0x11c5   :  { %v1160_v15 = vsel %vm383_vm6, %v1154_v1, %v1158_v7 }
0x11c6   :  { %1177 = vrot.lane.b32.xlu0 %v1160_v15, %s1706_s4  ;;  %1175 = vst.msk [vmem:[#allocation7] sm:$0x3] %vm39_vm1, %v1160_v15 }
0x11c8   :  { %v1167_v28 = vpop.permute.xlu1 %1166  ;;  %v1201_v30 = vld [vmem:[#allocation3 + $0x38] sm:$0xff] }
0x11c9   :  { %v1169_v34 = vsel %vm383_vm6, %v1163_v55, %v1167_v28  ;;  %v1209_v35 = vpack.c.bf16 %v1201_v30, %v1201_v30 }
0x11ca   :  { %1184 = vrot.lane.b32.xlu1 %v1169_v34, %s1706_s4  ;;  %1182 = vst.msk [vmem:[#allocation9] sm:$0x3] %vm39_vm1, %v1169_v34 }
0x11cb   :  { %v1231_v38 = vunpack.c.l.b16 %v1209_v35 }
0x11cd   :  { %v1250_v11 = vrot.slane %v1231_v38, 1  ;;  %v1322_v45 = vrot.slane %v1231_v38, 2 }
0x11cf   :  { %v1252_v17 = vsel %vm1251_vm15, %v1250_v11, %v1249_v16  ;;  %v1323_v47 = vsel %vm1251_vm15, %v1322_v45, %v1321_v46 }
0x11d0   :  { %v1253_v18 = vpack.c.b16 %v1252_v17, %v1252_v17  ;;  %v1324_v8 = vpack.c.b16 %v1323_v47, %v1323_v47 }
0x11d2   :  { %1481 = vmatmul.mubr.msk.bf16.vlgmr.msra.gmra.mrb[20].mxu1 %vm590_vm7, %v1253_v18 }
0x11d3   :  { %1485 = vmatpush3.bf16.msra.mxu1 %v2099_v29  ;;  %1488 = vmatprep.mubr.msk.bf16.mxu1 %vm1705_vm8, %v1702_v9 }
0x11d4   :  { %1486 = vmatprep.subr.bf16.mxu1 %v1702_v9 }
0x11d7   :  { %1487 = vmatpush3.bf16.msra.mxu1 %v2105_v56 }
0x11da   :  { %1489 = vmatmul.mubr.msk.bf16.vlgmr.msra.gmra.mrb[24].mxu1 %vm590_vm7, %v1324_v8 }
0x1238   :  { %v1178_v48 = vpop.permute.xlu0 %1177 }
0x1239   :  { %1181 = vst.msk [vmem:[#allocation7 + $0x2] sm:$0x3] %vm39_vm1, %v1178_v48 }
0x123a   :  { %1641 = shalt.err (!%p1638_p4)
}
0x123b   :  { %s1642_s13 = scalar_lea.hbm %s2200_s9, 64 }
0x123c   :  { %p1643_p5 = scmp.ne.s32.totalorder %s2200_s9, %s1642_s13  ;;  %p1646_p6 = scmp.lt.u32.totalorder %s1642_s13, %s2200_s9 }
0x123e   :  { %p1648_p7 = pnand %p1646_p6, %p1643_p5 }
0x1240   :  { %1651 = shalt.err (!%p1648_p7)
}
0x1241   :  { %s1709_s7 = smov 2   ;;  %v1185_v9 = vpop.permute.xlu1 %1184  ;;  %s1652_s20 = scalar_lea.vmem %s1399_s29, 64 }
0x1242   :  { %1392 = dma.vmem_to_hbm [thread:$0]  %s1387_s27, 64, %s2200_s9, [#allocation8], %s1700_s15, %s1700_s15, %s1709_s7   ;;  %1188 = vst.msk [vmem:[#allocation9 + $0x2] sm:$0x3] %vm39_vm1, %v1185_v9 }
0x1243   :  { %p1653_p8 = scmp.ne.s32.totalorder %s1399_s29, %s1652_s20  ;;  %p1657_p9 = scmp.lt.s32.totalorder %s1399_s29, %s1399_s29 }
0x1244   :  { %p1658_p10 = scmp.lt.s32.totalorder %s1652_s20, %s1652_s20 }
0x1246   :  { %p1659_p11 = por %p1658_p10, %p1657_p9 }
0x1248   :  { %p1660_p12 = pnand %p1659_p11, %p1653_p8 }
0x124a   :  { %1663 = shalt.err (!%p1660_p12)
}
0x124b   :  { %s1664_s1 = scalar_lea.hbm %s2201_s10, 64 }
0x124c   :  { %p1665_p13 = scmp.ne.s32.totalorder %s2201_s10, %s1664_s1  ;;  %p1668_p0 = scmp.lt.u32.totalorder %s1664_s1, %s2201_s10 }
0x124e   :  { %p1670_p1 = pnand %p1668_p0, %p1665_p13 }
0x1250   :  { %1673 = shalt.err (!%p1670_p1)
}
0x1251   :  { %1404 = dma.vmem_to_hbm [thread:$0]  %s1399_s29, 64, %s2201_s10, [#allocation8], %s1700_s15, %s1700_s15, %s1709_s7  }
0x1252   :  { %v1465_v29 = vld [vmem:[%s2196_s5] ss:$0 sm:$0xff]  ;;  %s1710_s26 = smov [#allocation5]  }
0x1253   :  { %s1374_s27 = sshll.u32 %s1710_s26, 4  ;;  %s1375_s27 = int_to_ptr.vmem [resolvable:$true] %s1374_s27 }
0x1254   :  { %s1674_s10 = scalar_lea.vmem %s1375_s27, 256  ;;  %p1679_p3 = scmp.lt.s32.totalorder %s1375_s27, %s1375_s27 }
0x1255   :  { %p1675_p2 = scmp.ne.s32.totalorder %s1375_s27, %s1674_s10  ;;  %p1680_p4 = scmp.lt.s32.totalorder %s1674_s10, %s1674_s10 }
0x1257   :  { %p1681_p5 = por %p1680_p4, %p1679_p3 }
0x1259   :  { %p1682_p6 = pnand %p1681_p5, %p1675_p2 }
0x12a5   :  { %v1303_v56 = vpop.f32.mrb[20].mxu1 }
0x12a6   :  { %v1304_v25 = vadd.f32 %v1465_v29, %v1303_v56  ;;  %v1482_v49 = vpop.f32.mrb[21].mxu1 }
0x12a7   :  { %v1306_v50 = vpop.f32.mrb[22].mxu1 }
0x12a8   :  { %1309 = vst.msk [vmem:[#allocation5] sm:$0xff] %vm103_vm2, %v1304_v25  ;;  %v1483_v51 = vpop.f32.mrb[23].mxu1 }
0x12ad   :  { %v1362_v52 = vpop.f32.mrb[24].mxu1 }
0x12ae   :  { %v1363_v53 = vadd.f32 %v1465_v29, %v1362_v52  ;;  %v1490_v54 = vpop.f32.mrb[25].mxu1 }
0x12af   :  { %v1365_v21 = vpop.f32.mrb[26].mxu1 }
0x12b0   :  { %1368 = vst.msk [vmem:[#allocation5 + $0x8] sm:$0xff] %vm103_vm2, %v1363_v53  ;;  %v1491_v24 = vpop.f32.mrb[27].mxu1 }
0x12b1   :  { %1685 = shalt.err (!%p1682_p6)
}
0x12b2   :  { %s1686_s28 = scalar_lea.hbm %s2199_s8, 256 }
0x12b3   :  { %p1687_p7 = scmp.ne.s32.totalorder %s2199_s8, %s1686_s28  ;;  %p1690_p8 = scmp.lt.u32.totalorder %s1686_s28, %s2199_s8 }
0x12b5   :  { %p1692_p9 = pnand %p1690_p8, %p1687_p7 }
0x12b7   :  { %1695 = shalt.err (!%p1692_p9)
}
0x12b8   :  { %s1711_s13 = smov 128   ;;  %s1712_s6 = smov 8  }
0x12b9   :  { %1380 = dma.vmem_to_hbm [thread:$0]  %s1375_s27, 256, %s2199_s8, [#allocation6], %s1711_s13, %s1711_s13, %s1712_s6  }
0x12ba   :  { %1696 = dma.done.wait [#allocation6], 256  }
0x12bb   :  { %1697 = vsyncadd [#allocation6], 4294967040 }
0x12bc   :  { %1698 = dma.done.wait [#allocation8], 128  }
0x12bd   :  { %1699 = vsyncadd [#allocation8], 4294967168 }
0x12be   :  { %1414 = vsyncpa [#allocation6], 1 }
0x12bf   :  { %1415 = vsyncpa [#allocation8], 1 }

</bundles_post_ra>
